<compile_context>
chip_gen: v7x
topology: tpu7x:2x2x1
jax: 0.10.0
libtpu: 0.0.40
codegen_flags: <defaults>
</compile_context>

<pallas_src>
import functools

import jax
import jax.numpy as jnp
from jax.experimental import pallas as pl
from jax.experimental.pallas import tpu as pltpu


def _round_up(x: int, m: int) -> int:
    return ((x + m - 1) // m) * m


def _make_amsoftmax_kernel(margin: float, scale: float, num_classes: int,
                           block_c: int, c_tiles: int):
    scaled_margin = float(scale) * float(margin)
    needs_class_mask = (c_tiles * block_c) != num_classes

    def kernel(x_ref, w_ref, winv_ref, lb_ref, out_ref,
               xn_ref, m_ref, l_ref, t_ref):
        k = pl.program_id(1)  # class-tile index (reduction axis, runs last)

        @pl.when(k == 0)
        def _init():
            # Row-normalize x once per row tile (f32), cache as bf16 for MXU.
            x = x_ref[...].astype(jnp.float32)
            rn = jnp.sqrt(jnp.sum(x * x, axis=1, keepdims=True))
            rn = jnp.maximum(rn, 1e-12)  # torch .clamp(min=1e-12)
            xn_ref[...] = (x / rn).astype(xn_ref.dtype)
            m_ref[...] = jnp.full(m_ref.shape, -jnp.inf, dtype=jnp.float32)
            l_ref[...] = jnp.zeros(l_ref.shape, dtype=jnp.float32)
            t_ref[...] = jnp.zeros(t_ref.shape, dtype=jnp.float32)

        # Cosine logits for this class tile: bf16 MXU inputs, f32 accumulate,
        # then scale by the precomputed inverse column norms.
        costh = jnp.dot(xn_ref[...], w_ref[...],
                        preferred_element_type=jnp.float32)      # [TM, TC]
        costh = costh * winv_ref[...]                            # (1, TC) bcast

        lb = lb_ref[...]                                          # [TM, 1] i32
        col = k * block_c + jax.lax.broadcasted_iota(
            jnp.int32, costh.shape, 1)                            # global class
        is_tgt = col == lb
        # TODO(synk): out-of-range labels silently get target-logit 0 instead
        # of raising like torch.nn.CrossEntropyLoss.
        sc = scale * costh
        logits = jnp.where(is_tgt, sc - scaled_margin, sc)
        if needs_class_mask:
            # Kill padded (non-existent) classes so they don't enter the LSE.
            logits = jnp.where(col < num_classes, logits, -1e30)

        # Online (flash-style) log-sum-exp over the class axis.
        m_prev = m_ref[...]
        m_new = jnp.maximum(m_prev, jnp.max(logits, axis=1, keepdims=True))
        alpha = jnp.exp(m_prev - m_new)
        l_ref[...] = alpha * l_ref[...] + jnp.sum(
            jnp.exp(logits - m_new), axis=1, keepdims=True)
        m_ref[...] = m_new
        # Each row's target class lives in exactly one class tile.
        t_ref[...] += jnp.sum(jnp.where(is_tgt, logits, 0.0),
                              axis=1, keepdims=True)

        @pl.when(k == c_tiles - 1)
        def _finalize():
            lse = m_ref[...] + jnp.log(l_ref[...])
            out_ref[...] = lse - t_ref[...]                       # per-row CE

    return kernel


def amsoftmax_loss(x, W, lb, *, margin=0.35, scale=30.0,
                   block_m=128, block_c=256):
    """x: [N, D] float, W: [D, C] float, lb: [N] int -> scalar f32 loss."""
    N, D = x.shape
    D2, C = W.shape
    assert D == D2 and lb.shape[0] == N

    # Hoisted: inverse L2 norm of each W column, in f32 (tiny XLA op).
    w_inv = 1.0 / jnp.maximum(
        jnp.sqrt(jnp.sum(W.astype(jnp.float32) ** 2, axis=0, keepdims=True)),
        1e-12)

    TM, TC = block_m, block_c
    n_pad = _round_up(N, TM)
    c_pad = _round_up(C, TC)
    d_pad = _round_up(D, 128)  # lane-dense contraction dim (zeros are inert)

    xp = jnp.zeros((n_pad, d_pad), jnp.float32).at[:N, :D].set(
        x.astype(jnp.float32))
    wp = jnp.zeros((d_pad, c_pad), jnp.bfloat16).at[:D, :C].set(
        W.astype(jnp.bfloat16))
    wip = jnp.zeros((1, c_pad), jnp.float32).at[:, :C].set(w_inv)
    lbp = jnp.zeros((n_pad, 1), jnp.int32).at[:N, 0].set(lb.astype(jnp.int32))

    m_tiles = n_pad // TM
    c_tiles = c_pad // TC

    kernel = _make_amsoftmax_kernel(float(margin), float(scale), C, TC, c_tiles)

    per_row = pl.pallas_call(
        kernel,
        out_shape=jax.ShapeDtypeStruct((n_pad, 1), jnp.float32),
        grid_spec=pltpu.PrefetchScalarGridSpec(
            num_scalar_prefetch=0,
            grid=(m_tiles, c_tiles),
            in_specs=[
                pl.BlockSpec((TM, d_pad), lambda i, k: (i, 0)),  # x rows
                pl.BlockSpec((d_pad, TC), lambda i, k: (0, k)),  # W (bf16) stream
                pl.BlockSpec((1, TC),     lambda i, k: (0, k)),  # 1/||w_c||
                pl.BlockSpec((TM, 1),     lambda i, k: (i, 0)),  # labels
            ],
            out_specs=pl.BlockSpec((TM, 1), lambda i, k: (i, 0)),
            scratch_shapes=[
                pltpu.VMEM((TM, d_pad), jnp.bfloat16),  # normalized x (bf16)
                pltpu.VMEM((TM, 1), jnp.float32),       # running max
                pltpu.VMEM((TM, 1), jnp.float32),       # running sum(exp)
                pltpu.VMEM((TM, 1), jnp.float32),       # target logit
            ],
        ),
        compiler_params=pltpu.CompilerParams(
            dimension_semantics=("parallel", "arbitrary"),
            vmem_limit_bytes=32 * 1024 * 1024,
        ),
        cost_estimate=pl.CostEstimate(
            flops=2 * n_pad * d_pad * c_pad,
            transcendentals=n_pad * c_pad,
            bytes_accessed=(xp.size * 4 + wp.size * 2 + wip.size * 4
                            + lbp.size * 4 + n_pad * 4),
        ),
    )(xp, wp, wip, lbp)

    # Mean over the real (non-padded) rows -> nn.CrossEntropyLoss default.
    return jnp.sum(per_row[:N, 0]) / N


def amsoftmax_loss_ref(x, W, lb, *, margin=0.35, scale=30.0):
    """Pure-JAX f32 reference mirroring the PyTorch forward."""
    x = x.astype(jnp.float32)
    W = W.astype(jnp.float32)
    xn = x / jnp.maximum(jnp.linalg.norm(x, axis=1, keepdims=True), 1e-12)
    wn = W / jnp.maximum(jnp.linalg.norm(W, axis=0, keepdims=True), 1e-12)
    costh = xn @ wn
    onehot = jax.nn.one_hot(lb, W.shape[1], dtype=jnp.float32)
    logits = scale * (costh - margin * onehot)
    logp = jax.nn.log_softmax(logits, axis=1)
    return -jnp.mean(jnp.sum(logp * onehot, axis=1))


if __name__ == "__main__":
    # Small deterministic setup consistent with the module (embedding_size=64,
    # num_classes=1000 -> exercises class-tile padding, batch=8).
    N, D, C = 8, 64, 1000
    margin, scale = 0.35, 30.0

    key = jax.random.PRNGKey(0)
    kx, kw, kl = jax.random.split(key, 3)

    x = jax.random.normal(kx, (N, D), dtype=jnp.float32)
    # Xavier-normal init for W: std = sqrt(2 / (fan_in + fan_out)).
    xavier_std = (2.0 / (D + C)) ** 0.5
    W = jax.random.normal(kw, (D, C), dtype=jnp.float32) * xavier_std
    lb = jax.random.randint(kl, (N,), 0, C, dtype=jnp.int32)

    loss = amsoftmax_loss(x, W, lb, margin=margin, scale=scale)
    loss = jax.block_until_ready(loss)

    ref = amsoftmax_loss_ref(x, W, lb, margin=margin, scale=scale)
    # bf16 MXU inputs (f32 accumulate) -> slightly looser tolerance than pure f32.
    assert jnp.allclose(loss, ref, rtol=2e-2, atol=2e-2), (loss, ref)

    print("KERNEL_OK")
</pallas_src>

<mosaic_0001>
module attributes {stable_mosaic.version = 11 : i64} {
  func.func @kernel(%arg0: i32, %arg1: i32, %arg2: memref<128x128xf32, #tpu.memory_space<vmem>>, %arg3: memref<128x256xbf16, #tpu.memory_space<vmem>>, %arg4: memref<1x256xf32, #tpu.memory_space<vmem>>, %arg5: memref<128x1xi32, #tpu.memory_space<vmem>>, %arg6: memref<128x1xf32, #tpu.memory_space<vmem>>, %arg7: memref<128x128xbf16, #tpu.memory_space<vmem>>, %arg8: memref<128x1xf32, #tpu.memory_space<vmem>>, %arg9: memref<128x1xf32, #tpu.memory_space<vmem>>, %arg10: memref<128x1xf32, #tpu.memory_space<vmem>>) attributes {dimension_semantics = [#tpu.dimension_semantics<parallel>, #tpu.dimension_semantics<arbitrary>], iteration_bounds = array<i64: 1, 4>, scalar_prefetch = 0 : i64, scratch_operands = 4 : i64, tpu.core_type = #tpu.core_type<tc>, window_params = [{transform_indices = @transform_0, window_bounds = array<i64: 128, 128>}, {transform_indices = @transform_1, window_bounds = array<i64: 128, 256>}, {transform_indices = @transform_2, window_bounds = array<i64: 1, 256>}, {transform_indices = @transform_3, window_bounds = array<i64: 128, 1>}, {transform_indices = @transform_4, window_bounds = array<i64: 128, 1>}]} {
    %c0_i32 = arith.constant 0 : i32
    %0 = arith.cmpi eq, %arg1, %c0_i32 : i32
    %1 = arith.extui %0 : i1 to i32
    %c0_i32_0 = arith.constant 0 : i32
    %2 = arith.cmpi ne, %1, %c0_i32_0 : i32
    scf.if %2 {
      %c0_28 = arith.constant 0 : index
      %c0_29 = arith.constant 0 : index
      %51 = vector.load %arg2[%c0_28, %c0_29] : memref<128x128xf32, #tpu.memory_space<vmem>>, vector<128x128xf32>
      %52 = arith.mulf %51, %51 : vector<128x128xf32>
      %cst_30 = arith.constant dense<0.000000e+00> : vector<128xf32>
      %53 = vector.multi_reduction <add>, %52, %cst_30 [1] : vector<128x128xf32> to vector<128xf32>
      %54 = vector.shape_cast %53 : vector<128xf32> to vector<128x1xf32>
      %55 = math.sqrt %54 : vector<128x1xf32>
      %cst_31 = arith.constant 9.99999996E-13 : f32
      %56 = vector.broadcast %cst_31 : f32 to vector<128x1xf32>
      %57 = arith.maximumf %55, %56 : vector<128x1xf32>
      %58 = vector.broadcast %57 : vector<128x1xf32> to vector<128x128xf32>
      %59 = arith.divf %51, %58 : vector<128x128xf32>
      %60 = arith.truncf %59 : vector<128x128xf32> to vector<128x128xbf16>
      %c0_32 = arith.constant 0 : index
      %c0_33 = arith.constant 0 : index
      %61 = vector.load %arg7[%c0_32, %c0_33] : memref<128x128xbf16, #tpu.memory_space<vmem>>, vector<128x128xbf16>
      tpu.vector_store %arg7[%c0_32, %c0_33], %60 {strides = array<i32>} : memref<128x128xbf16, #tpu.memory_space<vmem>>, vector<128x128xbf16>,
      %cst_34 = arith.constant 0xFF800000 : f32
      %62 = vector.broadcast %cst_34 : f32 to vector<128x1xf32>
      %c0_35 = arith.constant 0 : index
      %c0_36 = arith.constant 0 : index
      %63 = vector.load %arg8[%c0_35, %c0_36] : memref<128x1xf32, #tpu.memory_space<vmem>>, vector<128x1xf32>
      tpu.vector_store %arg8[%c0_35, %c0_36], %62 {strides = array<i32>} : memref<128x1xf32, #tpu.memory_space<vmem>>, vector<128x1xf32>,
      %cst_37 = arith.constant 0.000000e+00 : f32
      %64 = vector.broadcast %cst_37 : f32 to vector<128x1xf32>
      %c0_38 = arith.constant 0 : index
      %c0_39 = arith.constant 0 : index
      %65 = vector.load %arg9[%c0_38, %c0_39] : memref<128x1xf32, #tpu.memory_space<vmem>>, vector<128x1xf32>
      tpu.vector_store %arg9[%c0_38, %c0_39], %64 {strides = array<i32>} : memref<128x1xf32, #tpu.memory_space<vmem>>, vector<128x1xf32>,
      %cst_40 = arith.constant 0.000000e+00 : f32
      %66 = vector.broadcast %cst_40 : f32 to vector<128x1xf32>
      %c0_41 = arith.constant 0 : index
      %c0_42 = arith.constant 0 : index
      %67 = vector.load %arg10[%c0_41, %c0_42] : memref<128x1xf32, #tpu.memory_space<vmem>>, vector<128x1xf32>
      tpu.vector_store %arg10[%c0_41, %c0_42], %66 {strides = array<i32>} : memref<128x1xf32, #tpu.memory_space<vmem>>, vector<128x1xf32>,
    } else {
    }
    %c0 = arith.constant 0 : index
    %c0_1 = arith.constant 0 : index
    %3 = vector.load %arg7[%c0, %c0_1] : memref<128x128xbf16, #tpu.memory_space<vmem>>, vector<128x128xbf16>
    %c0_2 = arith.constant 0 : index
    %c0_3 = arith.constant 0 : index
    %4 = vector.load %arg3[%c0_2, %c0_3] : memref<128x256xbf16, #tpu.memory_space<vmem>>, vector<128x256xbf16>
    %cst = arith.constant dense<0.000000e+00> : vector<128x256xf32>
    %5 = tpu.matmul %3, %4, %cst {dimension_numbers = #tpu.dot_dimension_numbers<[1], [0], [0], [1], [0, 0, 1, 1], [], []>} : vector<128x128xbf16>, vector<128x256xbf16>, vector<128x256xf32> -> vector<128x256xf32>
    %c0_4 = arith.constant 0 : index
    %c0_5 = arith.constant 0 : index
    %6 = vector.load %arg4[%c0_4, %c0_5] : memref<1x256xf32, #tpu.memory_space<vmem>>, vector<1x256xf32>
    %7 = vector.broadcast %6 : vector<1x256xf32> to vector<128x256xf32>
    %8 = arith.mulf %5, %7 : vector<128x256xf32>
    %c0_6 = arith.constant 0 : index
    %c0_7 = arith.constant 0 : index
    %9 = vector.load %arg5[%c0_6, %c0_7] : memref<128x1xi32, #tpu.memory_space<vmem>>, vector<128x1xi32>
    %c256_i32 = arith.constant 256 : i32
    %10 = arith.muli %arg1, %c256_i32 : i32
    %11 = tpu.iota {dimensions = array<i32: 1>} : vector<128x256xi32>
    %12 = vector.broadcast %10 : i32 to vector<128x256xi32>
    %13 = arith.addi %12, %11 : vector<128x256xi32>
    %14 = vector.broadcast %9 : vector<128x1xi32> to vector<128x256xi32>
    %15 = arith.cmpi eq, %13, %14 : vector<128x256xi32>
    %cst_8 = arith.constant 3.000000e+01 : f32
    %16 = vector.broadcast %cst_8 : f32 to vector<128x256xf32>
    %17 = arith.mulf %16, %8 : vector<128x256xf32>
    %cst_9 = arith.constant 1.050000e+01 : f32
    %18 = vector.broadcast %cst_9 : f32 to vector<128x256xf32>
    %19 = arith.subf %17, %18 : vector<128x256xf32>
    %20 = arith.select %15, %19, %17 : vector<128x256xi1>, vector<128x256xf32>
    %c1000_i32 = arith.constant 1000 : i32
    %21 = vector.broadcast %c1000_i32 : i32 to vector<128x256xi32>
    %22 = arith.cmpi slt, %13, %21 : vector<128x256xi32>
    %cst_10 = arith.constant -1.000000e+30 : f32
    %23 = vector.broadcast %cst_10 : f32 to vector<128x256xf32>
    %24 = arith.select %22, %20, %23 : vector<128x256xi1>, vector<128x256xf32>
    %c0_11 = arith.constant 0 : index
    %c0_12 = arith.constant 0 : index
    %25 = vector.load %arg8[%c0_11, %c0_12] : memref<128x1xf32, #tpu.memory_space<vmem>>, vector<128x1xf32>
    %cst_13 = arith.constant dense<0xFF800000> : vector<128xf32>
    %26 = vector.multi_reduction <maximumf>, %24, %cst_13 [1] : vector<128x256xf32> to vector<128xf32>
    %27 = vector.shape_cast %26 : vector<128xf32> to vector<128x1xf32>
    %28 = arith.maximumf %25, %27 : vector<128x1xf32>
    %29 = arith.subf %25, %28 : vector<128x1xf32>
    %30 = math.exp %29 : vector<128x1xf32>
    %c0_14 = arith.constant 0 : index
    %c0_15 = arith.constant 0 : index
    %31 = vector.load %arg9[%c0_14, %c0_15] : memref<128x1xf32, #tpu.memory_space<vmem>>, vector<128x1xf32>
    %32 = arith.mulf %30, %31 : vector<128x1xf32>
    %33 = vector.broadcast %28 : vector<128x1xf32> to vector<128x256xf32>
    %34 = arith.subf %24, %33 : vector<128x256xf32>
    %35 = math.exp %34 : vector<128x256xf32>
    %cst_16 = arith.constant dense<0.000000e+00> : vector<128xf32>
    %36 = vector.multi_reduction <add>, %35, %cst_16 [1] : vector<128x256xf32> to vector<128xf32>
    %37 = vector.shape_cast %36 : vector<128xf32> to vector<128x1xf32>
    %38 = arith.addf %32, %37 : vector<128x1xf32>
    %c0_17 = arith.constant 0 : index
    %c0_18 = arith.constant 0 : index
    %39 = vector.load %arg9[%c0_17, %c0_18] : memref<128x1xf32, #tpu.memory_space<vmem>>, vector<128x1xf32>
    tpu.vector_store %arg9[%c0_17, %c0_18], %38 {strides = array<i32>} : memref<128x1xf32, #tpu.memory_space<vmem>>, vector<128x1xf32>,
    %c0_19 = arith.constant 0 : index
    %c0_20 = arith.constant 0 : index
    %40 = vector.load %arg8[%c0_19, %c0_20] : memref<128x1xf32, #tpu.memory_space<vmem>>, vector<128x1xf32>
    tpu.vector_store %arg8[%c0_19, %c0_20], %28 {strides = array<i32>} : memref<128x1xf32, #tpu.memory_space<vmem>>, vector<128x1xf32>,
    %c0_21 = arith.constant 0 : index
    %c0_22 = arith.constant 0 : index
    %41 = vector.load %arg10[%c0_21, %c0_22] : memref<128x1xf32, #tpu.memory_space<vmem>>, vector<128x1xf32>
    %cst_23 = arith.constant 0.000000e+00 : f32
    %42 = vector.broadcast %cst_23 : f32 to vector<128x256xf32>
    %43 = arith.select %15, %24, %42 : vector<128x256xi1>, vector<128x256xf32>
    %cst_24 = arith.constant dense<0.000000e+00> : vector<128xf32>
    %44 = vector.multi_reduction <add>, %43, %cst_24 [1] : vector<128x256xf32> to vector<128xf32>
    %45 = vector.shape_cast %44 : vector<128xf32> to vector<128x1xf32>
    %46 = arith.addf %41, %45 : vector<128x1xf32>
    %c0_25 = arith.constant 0 : index
    %c0_26 = arith.constant 0 : index
    %47 = vector.load %arg10[%c0_25, %c0_26] : memref<128x1xf32, #tpu.memory_space<vmem>>, vector<128x1xf32>
    tpu.vector_store %arg10[%c0_25, %c0_26], %46 {strides = array<i32>} : memref<128x1xf32, #tpu.memory_space<vmem>>, vector<128x1xf32>,
    %c3_i32 = arith.constant 3 : i32
    %48 = arith.cmpi eq, %arg1, %c3_i32 : i32
    %49 = arith.extui %48 : i1 to i32
    %c0_i32_27 = arith.constant 0 : i32
    %50 = arith.cmpi ne, %49, %c0_i32_27 : i32
    scf.if %50 {
      %c0_28 = arith.constant 0 : index
      %c0_29 = arith.constant 0 : index
      %51 = vector.load %arg8[%c0_28, %c0_29] : memref<128x1xf32, #tpu.memory_space<vmem>>, vector<128x1xf32>
      %c0_30 = arith.constant 0 : index
      %c0_31 = arith.constant 0 : index
      %52 = vector.load %arg9[%c0_30, %c0_31] : memref<128x1xf32, #tpu.memory_space<vmem>>, vector<128x1xf32>
      %53 = math.log %52 : vector<128x1xf32>
      %54 = arith.addf %51, %53 : vector<128x1xf32>
      %c0_32 = arith.constant 0 : index
      %c0_33 = arith.constant 0 : index
      %55 = vector.load %arg10[%c0_32, %c0_33] : memref<128x1xf32, #tpu.memory_space<vmem>>, vector<128x1xf32>
      %56 = arith.subf %54, %55 : vector<128x1xf32>
      %c0_34 = arith.constant 0 : index
      %c0_35 = arith.constant 0 : index
      %57 = vector.load %arg6[%c0_34, %c0_35] : memref<128x1xf32, #tpu.memory_space<vmem>>, vector<128x1xf32>
      tpu.vector_store %arg6[%c0_34, %c0_35], %56 {strides = array<i32>} : memref<128x1xf32, #tpu.memory_space<vmem>>, vector<128x1xf32>,
    } else {
    }
    return
  }
  func.func @transform_0(%arg0: i32, %arg1: i32) -> (i32, i32) {
    %c0_i32 = arith.constant 0 : i32
    %c0_i32_0 = arith.constant 0 : i32
    return %arg0, %c0_i32 : i32, i32
  }
  func.func @transform_1(%arg0: i32, %arg1: i32) -> (i32, i32) {
    %c0_i32 = arith.constant 0 : i32
    %c0_i32_0 = arith.constant 0 : i32
    return %c0_i32, %arg1 : i32, i32
  }
  func.func @transform_2(%arg0: i32, %arg1: i32) -> (i32, i32) {
    %c0_i32 = arith.constant 0 : i32
    %c0_i32_0 = arith.constant 0 : i32
    return %c0_i32, %arg1 : i32, i32
  }
  func.func @transform_3(%arg0: i32, %arg1: i32) -> (i32, i32) {
    %c0_i32 = arith.constant 0 : i32
    %c0_i32_0 = arith.constant 0 : i32
    return %arg0, %c0_i32 : i32, i32
  }
  func.func @transform_4(%arg0: i32, %arg1: i32) -> (i32, i32) {
    %c0_i32 = arith.constant 0 : i32
    %c0_i32_0 = arith.constant 0 : i32
    return %arg0, %c0_i32 : i32, i32
  }
}

</mosaic_0001>

<bundles_post_ra>
// kernel: tpu_custom_call.1
= control target key start
LH: loop header
LB: loop body
LE: loop exit
PB: predicated region body
PF: predicated region fallthrough
CT: control target
= control target key end

     0   :  { %9 = vsyncpa [#allocation7], 0  ;;  %s3900_s0 = inlined_call_operand.vmem [shape: f32[128,128], index: 0, kind: input, shape index: {}]   ;;  %s3901_s1 = inlined_call_operand.hbm [shape: bf16[128,1024], index: 1, kind: input, shape index: {}]   ;;  %s3902_s2 = inlined_call_operand.vmem [shape: f32[1,1024], index: 2, kind: input, shape index: {}]   ;;  %s3903_s3 = inlined_call_operand.vmem [shape: s32[128,1], index: 3, kind: input, shape index: {}]   ;;  %s3904_s4 = inlined_call_operand.vmem [shape: f32[128,1], index: 4, kind: output, shape index: {}]  }
   0x1   :  { %11 = vsyncpa [#allocation7 + $0x1], 0  ;;  %s2364_s15 = smov 0   ;;  %s2366_s16 = smov 0  }
   0x2   :  { %s2368_s17 = smov 0   ;;  %s2370_s18 = smov 0  }
   0x3   :  { %s2372_s19 = smov 0   ;;  %s2374_s20 = smov 0  }
   0x4 LB: > { %s1888_s21 = sadd.s32 4294967295, %s2330_s20   ;;  %s26_s22 = sadd.s32 1, %s2326_s19  ;;  %s2330_s20 = sphi %s2374_s20, %s17_s20   ;;  %s2326_s19 = sphi %s2372_s19, %s4056_s19   ;;  %s2322_s18 = sphi %s2370_s18, %s4055_s18   ;;  %s2318_s17 = sphi %s2368_s17, %s4054_s17   ;;  %s2314_s16 = sphi %s2366_s16, %s4053_s16   ;;  %s2310_s15 = sphi %s2364_s15, %s4052_s15  }
   0x5   : > { %p27_p0 = scmp.ge.s32.totalorder %s26_s22, 4  ;;  %s62_s23 = sadd.s32 1, %s2318_s17 }
   0x6   : > { %p69_p1 = scmp.ne.s32.totalorder %s2318_s17, %s2314_s16  ;;  %p70_p2 = scmp.eq.s32.totalorder %s2330_s20, 0 }
   0x7   : > { %s4058_s22 = smov (%p27_p0, %s26_s22), 0  ;;  %p75_p4 = scmp.ne.s32.totalorder %s2314_s16, %s2310_s15 }
   0x8   : > { %p2400_p3 = por %p70_p2, %p69_p1  ;;  %s59_s25 = ssub.s32 %s2326_s19, %s4058_s22 }
   0x9   : > { %p76_p5 = scmp.eq.s32.totalorder %s1888_s21, 0  ;;  %p60_p6 = scmp.eq.s32.totalorder %s59_s25, 0 }
   0xa   : > { %p1977_p8 = scmp.lt.s32.totalorder %s2330_s20, 4  ;;  %s195_s28 = sand.u32 1, %s2318_s17  }
   0xb   : > { %p2407_p7 = por %p76_p5, %p75_p4  ;;  %s1954_s29 = sshll.u32 %s2326_s19, 7 }
   0xc   : > { %s2413_s27 = scalar_select %p60_p6, %s2318_s17, %s62_s23  }
   0xd   : > { %s1893_s30 = sshll.u32 %s195_s28, 7  ;;  %s2420_s7 = scalar_lea.hbm %s3901_s1, %s1954_s29 }
   0xe   : > { %s199_s8 = scalar_lea.vmem [#allocation6], %s1893_s30  ;;  %p2424_p9 = pnand %p1977_p8, %p2400_p3 }
   0xf   : > { %s206_s9 = sshll.u32 %s199_s8, 4  ;;  %s2431_s11 = scalar_lea.sflag [#allocation7], %s195_s28  ;;  %s2428_s9 = int_to_ptr.vmem [resolvable:$true] %s206_s9 }
  0x10   : > { %s2250_s12 = scalar_lea.hbm %s2420_s7, 2048  ;;  %p2252_p12 = pneg %p2424_p9 }
  0x11   : > { %p2251_p11 = scmp.ne.s32.totalorder %s2420_s7, %s2250_s12  ;;  %s2255_s15 = scalar_lea.hbm %s3901_s1, 8192 }
  0x12   : > { %p2256_p1 = scmp.lt.u32.totalorder %s2420_s7, %s3901_s1  ;;  %p2257_p2 = scmp.lt.u32.totalorder %s2255_s15, %s2250_s12 }
  0x13   : > { %p2253_p13 = pnand %p2252_p12, %p2251_p11  ;;  %p2259_p4 = scmp.lt.u32.totalorder %s2250_s12, %s2420_s7 }
  0x14   : > { %p2258_p3 = por %p2257_p2, %p2256_p1 }
  0x15   : > { %p2254_p0 = pneg %p2253_p13 }
  0x16   : > { %p2260_p5 = por %p2259_p4, %p2258_p3 }
  0x18   : > { %p2261_p6 = pnand %p2260_p5, %p2254_p0 }
  0x1a   : > { %2264 = shalt.err (!%p2261_p6)
}
  0x1b   : > { %s2265_s24 = scalar_lea.vmem %s2428_s9, 2048  ;;  %s2332_s25 = smov [#allocation6]  }
  0x1c   : > { %p2266_p8 = scmp.ne.s32.totalorder %s2428_s9, %s2265_s24  ;;  %s2270_s28 = sshll.u32 %s2332_s25, 4  ;;  %s2271_s28 = int_to_ptr.vmem [resolvable:$false] %s2270_s28 }
  0x1d   : > { %s2272_s29 = scalar_lea.vmem %s2271_s28, 4096  ;;  %p2273_p10 = scmp.lt.s32.totalorder %s2428_s9, %s2271_s28 }
  0x1e   : > { %p2268_p11 = pnand %p2266_p8, %p2252_p12  ;;  %p2274_p1 = scmp.lt.s32.totalorder %s2272_s29, %s2265_s24 }
  0x20   : > { %p2269_p13 = pneg %p2268_p11  ;;  %p2275_p2 = por %p2274_p1, %p2273_p10 }
  0x22   : > { %p2276_p3 = pnand %p2275_p2, %p2269_p13 }
  0x24   : > { %2279 = shalt.err (!%p2276_p3)
}
  0x25   : > { %s2333_s30 = smov 512   ;;  %s2334_s5 = smov 128  }
  0x26   : > { %s2335_s6 = smov 8   ;;  %p222_p12 = scmp.lt.s32.totalorder %s2330_s20, 5 }
  0x27   : > { %1976 = dma.hbm_to_vmem [thread:$0]  (!%p2424_p9), %s2420_s7, 2048, %s2428_s9, %s2431_s11, %s2333_s30, %s2334_s5, %s2335_s6  }
  0x28   : > { %p3959_p0 = scmp.ge.s32.totalorder %s2330_s20, 1 }
  0x2a   : > { %p223_p4 = pnand %p3959_p0, %p222_p12 }
  0x2c   : > { %226 = sbr.rel (%p223_p4) target bundleno = 1036 (0x40c), region = 36 }
  0x33   : > { %s228_s8 = sand.u32 1, %s2314_s16  }
  0x34   : > { %s1897_s12 = sshll.u32 %s228_s8, 7  ;;  %s229_s13 = scalar_lea.sflag [#allocation7], %s228_s8 }
  0x35   : > { %s2463_s14 = scalar_lea.vmem [#allocation6], %s1897_s12 }
  0x36   : > { %2305 = dma.done.wait (%p2407_p7), %s229_s13, 2048  }
  0x37   : > { %2307 = vsyncadd (%p2407_p7), %s229_s13, 4294965248  ;;  %s1898_s15 = sshll.u32 %s2322_s18, 1  ;;  %p1899_p9 = scmp.ne.s32.totalorder %s2322_s18, 0 }
  0x38   : > { %p279_p10 = scmp.lt.s32.totalorder %s1898_s15, 7  ;;  %v2480_v0 = vld [vmem:[%s3900_s0 + $0x10] sm:$0xff] (!%p1899_p9)  ;;  %v2485_v1 = vld [vmem:[%s3900_s0] sm:$0xff] (!%p1899_p9)  ;;  %v2490_v2 = vld [vmem:[%s3900_s0 + $0x18] sm:$0xff] (!%p1899_p9)  ;;  %vm540_vm0 = vcmask (!%p1899_p9), 7168   ;;  %v2336_v32 = vmov (!%p1899_p9), -inf  }
  0x39   : > { %299 = sbr.rel (%p1899_p9) target bundleno = 268 (0x10c), region = 44  ;;  %v318_v3 = vmul.f32 (!%p1899_p9), %v2480_v0, %v2480_v0  ;;  %v316_v4 = vmul.f32 (!%p1899_p9), %v2485_v1, %v2485_v1  ;;  %v2499_v5 = vld [vmem:[%s3900_s0 + $0x8] sm:$0xff] (!%p1899_p9)  ;;  %v319_v6 = vmul.f32 (!%p1899_p9), %v2490_v2, %v2490_v2  ;;  %v2513_v9 = vld [vmem:[%s3900_s0 + $0x20] sm:$0xff] (!%p1899_p9)  ;;  %v2522_v12 = vld [vmem:[%s3900_s0 + $0x38] sm:$0xff] (!%p1899_p9)  ;;  %541 = vst.msk [vmem:[#allocation3] sm:$0xff] (!%p1899_p9), %vm540_vm0, %v2336_v32  ;;  %v2337_v33 = vmov (!%p1899_p9), 0.0  }
  0x3a   : > { %s4060_s15 = smov (!%p279_p10, %s1898_s15), 7  ;;  %v317_v7 = vmul.f32 (!%p1899_p9), %v2499_v5, %v2499_v5  ;;  %v2508_v8 = vld [vmem:[%s3900_s0 + $0x28] sm:$0xff] (!%p1899_p9)  ;;  %v320_v11 = vmul.f32 (!%p1899_p9), %v2513_v9, %v2513_v9  ;;  %v2527_v13 = vld [vmem:[%s3900_s0 + $0x30] sm:$0xff] (!%p1899_p9)  ;;  %v323_v14 = vmul.f32 (!%p1899_p9), %v2522_v12, %v2522_v12  ;;  %v2541_v17 = vld [vmem:[%s3900_s0 + $0x40] sm:$0xff] (!%p1899_p9)  ;;  %542 = vst.msk [vmem:[#allocation3 + $0x8] sm:$0xff] (!%p1899_p9), %vm540_vm0, %v2336_v32 }
  0x3b   : > { %s281_s10 = scalar_lea.vmem %s3902_s2, %s4060_s15  ;;  %336 = vadd.xlane.f32.xlu1 (!%p1899_p9), %v318_v3  ;;  %332 = vadd.xlane.f32.xlu0 (!%p1899_p9), %v316_v4  ;;  %v321_v10 = vmul.f32 (!%p1899_p9), %v2508_v8, %v2508_v8  ;;  %v322_v15 = vmul.f32 (!%p1899_p9), %v2527_v13, %v2527_v13  ;;  %v2536_v16 = vld [vmem:[%s3900_s0 + $0x48] sm:$0xff] (!%p1899_p9)  ;;  %v324_v19 = vmul.f32 (!%p1899_p9), %v2541_v17, %v2541_v17  ;;  %v2550_v20 = vld [vmem:[%s3900_s0 + $0x58] sm:$0xff] (!%p1899_p9)  ;;  %v2555_v21 = vld [vmem:[%s3900_s0 + $0x50] sm:$0xff] (!%p1899_p9) }
  0x3c   : > { %v325_v18 = vmul.f32 (!%p1899_p9), %v2536_v16, %v2536_v16  ;;  %v327_v22 = vmul.f32 (!%p1899_p9), %v2550_v20, %v2550_v20  ;;  %v326_v23 = vmul.f32 (!%p1899_p9), %v2555_v21, %v2555_v21  ;;  %v2564_v24 = vld [vmem:[%s3900_s0 + $0x68] sm:$0xff] (!%p1899_p9)  ;;  %v2569_v25 = vld [vmem:[%s3900_s0 + $0x60] sm:$0xff] (!%p1899_p9)  ;;  %v2578_v28 = vld [vmem:[%s3900_s0 + $0x78] sm:$0xff] (!%p1899_p9)  ;;  %543 = vst.msk [vmem:[#allocation3 + $0x10] sm:$0xff] (!%p1899_p9), %vm540_vm0, %v2336_v32 }
  0x3d   : > { %v329_v26 = vmul.f32 (!%p1899_p9), %v2564_v24, %v2564_v24  ;;  %v328_v27 = vmul.f32 (!%p1899_p9), %v2569_v25, %v2569_v25  ;;  %v2583_v29 = vld [vmem:[%s3900_s0 + $0x70] sm:$0xff] (!%p1899_p9)  ;;  %v331_v30 = vmul.f32 (!%p1899_p9), %v2578_v28, %v2578_v28  ;;  %544 = vst.msk [vmem:[#allocation3 + $0x18] sm:$0xff] (!%p1899_p9), %vm540_vm0, %v2336_v32  ;;  %545 = vst.msk [vmem:[#allocation3 + $0x20] sm:$0xff] (!%p1899_p9), %vm540_vm0, %v2336_v32 }
  0x3e   : > { %v330_v31 = vmul.f32 (!%p1899_p9), %v2583_v29, %v2583_v29  ;;  %546 = vst.msk [vmem:[#allocation3 + $0x28] sm:$0xff] (!%p1899_p9), %vm540_vm0, %v2336_v32  ;;  %547 = vst.msk [vmem:[#allocation3 + $0x30] sm:$0xff] (!%p1899_p9), %vm540_vm0, %v2336_v32 }
  0x3f   : > { %338 = vadd.xlane.f32.xlu1 (!%p1899_p9), %v319_v6  ;;  %334 = vadd.xlane.f32.xlu0 (!%p1899_p9), %v317_v7  ;;  %548 = vst.msk [vmem:[#allocation3 + $0x38] sm:$0xff] (!%p1899_p9), %vm540_vm0, %v2336_v32  ;;  %549 = vst.msk [vmem:[#allocation3 + $0x40] sm:$0xff] (!%p1899_p9), %vm540_vm0, %v2336_v32 }
  0x40   : > { %550 = vst.msk [vmem:[#allocation3 + $0x48] sm:$0xff] %vm540_vm0, %v2336_v32  ;;  %551 = vst.msk [vmem:[#allocation3 + $0x50] sm:$0xff] %vm540_vm0, %v2336_v32 }
  0x41   : > { %552 = vst.msk [vmem:[#allocation3 + $0x58] sm:$0xff] %vm540_vm0, %v2336_v32  ;;  %553 = vst.msk [vmem:[#allocation3 + $0x60] sm:$0xff] %vm540_vm0, %v2336_v32 }
  0x42   : > { %554 = vst.msk [vmem:[#allocation3 + $0x68] sm:$0xff] %vm540_vm0, %v2336_v32  ;;  %555 = vst.msk [vmem:[#allocation3 + $0x70] sm:$0xff] %vm540_vm0, %v2336_v32 }
  0x43   : > { %342 = vadd.xlane.f32.xlu1 %v321_v10  ;;  %340 = vadd.xlane.f32.xlu0 %v320_v11  ;;  %556 = vst.msk [vmem:[#allocation3 + $0x78] sm:$0xff] %vm540_vm0, %v2336_v32  ;;  %557 = vst.msk [vmem:[#allocation4] sm:$0xff] %vm540_vm0, %v2337_v33 }
  0x44   : > { %558 = vst.msk [vmem:[#allocation4 + $0x8] sm:$0xff] %vm540_vm0, %v2337_v33  ;;  %559 = vst.msk [vmem:[#allocation4 + $0x10] sm:$0xff] %vm540_vm0, %v2337_v33 }
  0x45   : > { %560 = vst.msk [vmem:[#allocation4 + $0x18] sm:$0xff] %vm540_vm0, %v2337_v33  ;;  %561 = vst.msk [vmem:[#allocation4 + $0x20] sm:$0xff] %vm540_vm0, %v2337_v33 }
  0x46   : > { %562 = vst.msk [vmem:[#allocation4 + $0x28] sm:$0xff] %vm540_vm0, %v2337_v33  ;;  %563 = vst.msk [vmem:[#allocation4 + $0x30] sm:$0xff] %vm540_vm0, %v2337_v33 }
  0x47   : > { %346 = vadd.xlane.f32.xlu1 %v323_v14  ;;  %344 = vadd.xlane.f32.xlu0 %v322_v15  ;;  %564 = vst.msk [vmem:[#allocation4 + $0x38] sm:$0xff] %vm540_vm0, %v2337_v33  ;;  %565 = vst.msk [vmem:[#allocation4 + $0x40] sm:$0xff] %vm540_vm0, %v2337_v33 }
  0x48   : > { %566 = vst.msk [vmem:[#allocation4 + $0x48] sm:$0xff] %vm540_vm0, %v2337_v33  ;;  %567 = vst.msk [vmem:[#allocation4 + $0x50] sm:$0xff] %vm540_vm0, %v2337_v33 }
  0x49   : > { %568 = vst.msk [vmem:[#allocation4 + $0x58] sm:$0xff] %vm540_vm0, %v2337_v33  ;;  %569 = vst.msk [vmem:[#allocation4 + $0x60] sm:$0xff] %vm540_vm0, %v2337_v33 }
  0x4a   : > { %570 = vst.msk [vmem:[#allocation4 + $0x68] sm:$0xff] %vm540_vm0, %v2337_v33  ;;  %571 = vst.msk [vmem:[#allocation4 + $0x70] sm:$0xff] %vm540_vm0, %v2337_v33 }
  0x4b   : > { %350 = vadd.xlane.f32.xlu1 %v325_v18  ;;  %348 = vadd.xlane.f32.xlu0 %v324_v19  ;;  %572 = vst.msk [vmem:[#allocation4 + $0x78] sm:$0xff] %vm540_vm0, %v2337_v33  ;;  %573 = vst.msk [vmem:[#allocation5] sm:$0xff] %vm540_vm0, %v2337_v33 }
  0x4c   : > { %574 = vst.msk [vmem:[#allocation5 + $0x8] sm:$0xff] %vm540_vm0, %v2337_v33  ;;  %575 = vst.msk [vmem:[#allocation5 + $0x10] sm:$0xff] %vm540_vm0, %v2337_v33 }
  0x4d   : > { %576 = vst.msk [vmem:[#allocation5 + $0x18] sm:$0xff] %vm540_vm0, %v2337_v33  ;;  %577 = vst.msk [vmem:[#allocation5 + $0x20] sm:$0xff] %vm540_vm0, %v2337_v33 }
  0x4e   : > { %578 = vst.msk [vmem:[#allocation5 + $0x28] sm:$0xff] %vm540_vm0, %v2337_v33  ;;  %579 = vst.msk [vmem:[#allocation5 + $0x30] sm:$0xff] %vm540_vm0, %v2337_v33 }
  0x4f   : > { %354 = vadd.xlane.f32.xlu1 %v327_v22  ;;  %352 = vadd.xlane.f32.xlu0 %v326_v23  ;;  %580 = vst.msk [vmem:[#allocation5 + $0x38] sm:$0xff] %vm540_vm0, %v2337_v33  ;;  %581 = vst.msk [vmem:[#allocation5 + $0x40] sm:$0xff] %vm540_vm0, %v2337_v33 }
  0x50   : > { %582 = vst.msk [vmem:[#allocation5 + $0x48] sm:$0xff] %vm540_vm0, %v2337_v33  ;;  %583 = vst.msk [vmem:[#allocation5 + $0x50] sm:$0xff] %vm540_vm0, %v2337_v33 }
  0x51   : > { %584 = vst.msk [vmem:[#allocation5 + $0x58] sm:$0xff] %vm540_vm0, %v2337_v33  ;;  %585 = vst.msk [vmem:[#allocation5 + $0x60] sm:$0xff] %vm540_vm0, %v2337_v33 }
  0x52   : > { %586 = vst.msk [vmem:[#allocation5 + $0x68] sm:$0xff] %vm540_vm0, %v2337_v33  ;;  %587 = vst.msk [vmem:[#allocation5 + $0x70] sm:$0xff] %vm540_vm0, %v2337_v33 }
  0x53   : > { %358 = vadd.xlane.f32.xlu1 %v329_v26  ;;  %356 = vadd.xlane.f32.xlu0 %v328_v27  ;;  %588 = vst.msk [vmem:[#allocation5 + $0x78] sm:$0xff] %vm540_vm0, %v2337_v33 }
  0x57   : > { %362 = vadd.xlane.f32.xlu1 %v331_v30  ;;  %360 = vadd.xlane.f32.xlu0 %v330_v31 }
  0xc8   : > { %v337_v34 = vpop.xlane.xlu1 %336  ;;  %v333_v35 = vpop.xlane.xlu0 %332 }
  0xc9   : > { %2032 = vrsqrt.f32 %v337_v34  ;;  %vm380_vm1 = vcmp.eq.f32.partialorder %v337_v34, inf  ;;  %vm382_vm2 = vcmp.eq.f32.partialorder %v337_v34, 0.0  ;;  %v383_v43 = vand.u32 2147483648, %v337_v34 }
  0xca   : > { %2034 = vrsqrt.f32 %v333_v35  ;;  %vm366_vm3 = vcmp.eq.f32.partialorder %v333_v35, inf  ;;  %vm368_vm4 = vcmp.eq.f32.partialorder %v333_v35, 0.0  ;;  %v369_v47 = vand.u32 2147483648, %v333_v35 }
  0xcc   : > { %v339_v36 = vpop.xlane.xlu1 %338  ;;  %v335_v37 = vpop.xlane.xlu0 %334 }
  0xcd   : > { %2036 = vrsqrt.f32 %v339_v36  ;;  %vm387_vm5 = vcmp.eq.f32.partialorder %v339_v36, inf  ;;  %vm389_vm6 = vcmp.eq.f32.partialorder %v339_v36, 0.0  ;;  %v390_v52 = vand.u32 2147483648, %v339_v36 }
  0xce   : > { %2038 = vrsqrt.f32 %v335_v37  ;;  %vm373_vm7 = vcmp.eq.f32.partialorder %v335_v37, inf  ;;  %vm375_vm8 = vcmp.eq.f32.partialorder %v335_v37, 0.0  ;;  %v376_v61 = vand.u32 2147483648, %v335_v37 }
  0xd0   : > { %v2637_v38 = vpop.xlane.xlu1 %342  ;;  %v2639_v39 = vpop.xlane.xlu0 %340 }
  0xd1   : > { %2040 = vrsqrt.f32 %v2637_v38  ;;  %vm401_vm9 = vcmp.eq.f32.partialorder %v2637_v38, inf  ;;  %vm403_vm10 = vcmp.eq.f32.partialorder %v2637_v38, 0.0  ;;  %v404_v63 = vand.u32 2147483648, %v2637_v38 }
  0xd2   : > { %2042 = vrsqrt.f32 %v2639_v39  ;;  %vm394_vm11 = vcmp.eq.f32.partialorder %v2639_v39, inf  ;;  %vm396_vm12 = vcmp.eq.f32.partialorder %v2639_v39, 0.0  ;;  %v397_v26 = vand.u32 2147483648, %v2639_v39 }
  0xd3   : > { %v2033_v40 = vpop.eup %2032 }
  0xd4   : > { %v2035_v41 = vpop.eup %2034  ;;  %v379_v42 = vmul.f32 %v2033_v40, %v337_v34  ;;  %v2643_v44 = vpop.xlane.xlu1 %346 }
  0xd5   : > { %v2645_v45 = vpop.xlane.xlu0 %344  ;;  %v365_v46 = vmul.f32 %v2035_v41, %v333_v35  ;;  %2044 = vrsqrt.f32 %v2643_v44  ;;  %vm415_vm13 = vcmp.eq.f32.partialorder %v2643_v44, inf  ;;  %vm417_vm14 = vcmp.eq.f32.partialorder %v2643_v44, 0.0 }
  0xd6   : > { %v381_v48 = vsel %vm380_vm1, %v337_v34, %v379_v42  ;;  %2046 = vrsqrt.f32 %v2645_v45  ;;  %v418_v40 = vand.u32 2147483648, %v2643_v44  ;;  %vm408_vm15 = vcmp.eq.f32.partialorder %v2645_v45, inf }
  0xd7   : > { %v2037_v49 = vpop.eup %2036  ;;  %v384_v50 = vsel %vm382_vm2, %v383_v43, %v381_v48  ;;  %v367_v51 = vsel %vm366_vm3, %v333_v35, %v365_v46  ;;  %v411_v41 = vand.u32 2147483648, %v2645_v45  ;;  %vm410_vm0 = vcmp.eq.f32.partialorder %v2645_v45, 0.0 }
  0xd8   : > { %v2039_v53 = vpop.eup %2038  ;;  %v478_v54 = vmax.f32 %v384_v50, 1e-12  ;;  %v370_v55 = vsel %vm368_vm4, %v369_v47, %v367_v51  ;;  %v386_v56 = vmul.f32 %v2037_v49, %v339_v36  ;;  %v2649_v57 = vpop.xlane.xlu1 %350 }
  0xd9   : > { %v2651_v58 = vpop.xlane.xlu0 %348  ;;  %v476_v59 = vmax.f32 %v370_v55, 1e-12  ;;  %v372_v60 = vmul.f32 %v2039_v53, %v335_v37  ;;  %2048 = vrsqrt.f32 %v2649_v57  ;;  %vm429_vm1 = vcmp.eq.f32.partialorder %v2649_v57, inf }
  0xda   : > { %v388_v62 = vsel %vm387_vm5, %v339_v36, %v386_v56  ;;  %2050 = vrcp.f32 %v478_v54  ;;  %vm431_vm2 = vcmp.eq.f32.partialorder %v2649_v57, 0.0  ;;  %v432_v53 = vand.u32 2147483648, %v2649_v57 }
  0xdb   : > { %v2041_v3 = vpop.eup %2040  ;;  %v391_v4 = vsel %vm389_vm6, %v390_v52, %v388_v62  ;;  %v374_v6 = vsel %vm373_vm7, %v335_v37, %v372_v60  ;;  %2052 = vrsqrt.f32 %v2651_v58  ;;  %vm422_vm3 = vcmp.eq.f32.partialorder %v2651_v58, inf }
  0xdc   : > { %v2043_v7 = vpop.eup %2042  ;;  %v479_v10 = vmax.f32 %v391_v4, 1e-12  ;;  %v377_v11 = vsel %vm375_vm8, %v376_v61, %v374_v6  ;;  %v400_v14 = vmul.f32 %v2041_v3, %v2637_v38  ;;  %v2664_v15 = vpop.xlane.xlu1 %354  ;;  %2054 = vrcp.f32 %v476_v59 }
  0xdd   : > { %v2666_v18 = vpop.xlane.xlu0 %352  ;;  %v477_v19 = vmax.f32 %v377_v11, 1e-12  ;;  %v393_v22 = vmul.f32 %v2043_v7, %v2639_v39  ;;  %vm424_vm4 = vcmp.eq.f32.partialorder %v2651_v58, 0.0  ;;  %v425_v60 = vand.u32 2147483648, %v2651_v58 }
  0xde   : > { %2056 = vrcp.f32 %v479_v10  ;;  %v402_v23 = vsel %vm401_vm9, %v2637_v38, %v400_v14  ;;  %vm443_vm5 = vcmp.eq.f32.partialorder %v2664_v15, inf  ;;  %vm445_vm6 = vcmp.eq.f32.partialorder %v2664_v15, 0.0 }
  0xdf   : > { %v2045_v27 = vpop.eup %2044  ;;  %2058 = vrcp.f32 %v477_v19  ;;  %v405_v30 = vsel %vm403_vm10, %v404_v63, %v402_v23  ;;  %v395_v31 = vsel %vm394_vm11, %v2639_v39, %v393_v22  ;;  %vm436_vm7 = vcmp.eq.f32.partialorder %v2666_v18, inf }
  0xe0   : > { %v2047_v32 = vpop.eup %2046  ;;  %v481_v33 = vmax.f32 %v405_v30, 1e-12  ;;  %v398_v34 = vsel %vm396_vm12, %v397_v26, %v395_v31  ;;  %v414_v35 = vmul.f32 %v2045_v27, %v2643_v44  ;;  %2060 = vrsqrt.f32 %v2664_v15  ;;  %v2683_v36 = vpop.xlane.xlu1 %358 }
  0xe1   : > { %v480_v37 = vmax.f32 %v398_v34, 1e-12  ;;  %v407_v38 = vmul.f32 %v2047_v32, %v2645_v45  ;;  %2062 = vrsqrt.f32 %v2666_v18  ;;  %v2693_v42 = vpop.xlane.xlu0 %356  ;;  %v446_v27 = vand.u32 2147483648, %v2664_v15 }
  0xe2   : > { %2064 = vrcp.f32 %v481_v33  ;;  %v416_v39 = vsel %vm415_vm13, %v2643_v44, %v414_v35  ;;  %v439_v31 = vand.u32 2147483648, %v2666_v18  ;;  %vm438_vm8 = vcmp.eq.f32.partialorder %v2666_v18, 0.0 }
  0xe3   : > { %v2049_v43 = vpop.eup %2048  ;;  %2066 = vrcp.f32 %v480_v37  ;;  %v419_v46 = vsel %vm417_vm14, %v418_v40, %v416_v39  ;;  %v409_v47 = vsel %vm408_vm15, %v2645_v45, %v407_v38  ;;  %vm457_vm9 = vcmp.eq.f32.partialorder %v2683_v36, inf }
  0xe4   : > { %v483_v48 = vmax.f32 %v419_v46, 1e-12  ;;  %v412_v49 = vsel %vm410_vm0, %v411_v41, %v409_v47  ;;  %v428_v50 = vmul.f32 %v2049_v43, %v2649_v57  ;;  %2068 = vrsqrt.f32 %v2683_v36  ;;  %v2051_v51 = vpop.eup %2050  ;;  %v2707_v45 = vpop.xlane.xlu1 %362 }
  0xe5   : > { %v482_v52 = vmax.f32 %v412_v49, 1e-12  ;;  %v2053_v44 = vpop.eup %2052  ;;  %v497_v3 = vmul.f32 %v2051_v51, %v2480_v0  ;;  %v460_v43 = vand.u32 2147483648, %v2683_v36  ;;  %vm459_vm10 = vcmp.eq.f32.partialorder %v2683_v36, 0.0 }
  0xe6   : > { %2070 = vrcp.f32 %v483_v48  ;;  %v430_v54 = vsel %vm429_vm1, %v2649_v57, %v428_v50  ;;  %v2055_v55 = vpop.eup %2054  ;;  %v421_v59 = vmul.f32 %v2053_v44, %v2651_v58  ;;  %v2714_v57 = vpop.xlane.xlu0 %360  ;;  %vm450_vm11 = vcmp.eq.f32.partialorder %v2693_v42, inf }
  0xe7   : > { %2072 = vrcp.f32 %v482_v52  ;;  %v433_v56 = vsel %vm431_vm2, %v432_v53, %v430_v54  ;;  %v493_v10 = vmul.f32 %v2055_v55, %v2485_v1  ;;  %vm452_vm12 = vcmp.eq.f32.partialorder %v2693_v42, 0.0 }
  0xe8   : > { %v2057_v61 = vpop.eup %2056  ;;  %v485_v62 = vmax.f32 %v433_v56, 1e-12  ;;  %2074 = vrsqrt.f32 %v2693_v42  ;;  %v423_v6 = vsel %vm422_vm3, %v2651_v58, %v421_v59  ;;  %v453_v53 = vand.u32 2147483648, %v2693_v42 }
  0xe9   : > { %v2059_v63 = vpop.eup %2058  ;;  %v499_v4 = vmul.f32 %v2057_v61, %v2490_v2  ;;  %2076 = vrsqrt.f32 %v2707_v45  ;;  %v426_v14 = vsel %vm424_vm4, %v425_v60, %v423_v6  ;;  %vm471_vm13 = vcmp.eq.f32.partialorder %v2707_v45, inf }
  0xea   : > { %v2061_v7 = vpop.eup %2060  ;;  %v495_v11 = vmul.f32 %v2059_v63, %v2499_v5  ;;  %2078 = vrcp.f32 %v485_v62  ;;  %v484_v0 = vmax.f32 %v426_v14, 1e-12  ;;  %vm473_vm14 = vcmp.eq.f32.partialorder %v2707_v45, 0.0 }
  0xeb   : > { %v2063_v19 = vpop.eup %2062  ;;  %v525_v22 = vpack.c.bf16 %v499_v4, %v497_v3  ;;  %v442_v2 = vmul.f32 %v2061_v7, %v2664_v15  ;;  %2080 = vrsqrt.f32 %v2714_v57  ;;  %v474_v54 = vand.u32 2147483648, %v2707_v45 }
  0xec   : > { %v2065_v23 = vpop.eup %2064  ;;  %v524_v26 = vpack.c.bf16 %v495_v11, %v493_v10  ;;  %v435_v30 = vmul.f32 %v2063_v19, %v2666_v18  ;;  %2082 = vrcp.f32 %v484_v0  ;;  %vm464_vm15 = vcmp.eq.f32.partialorder %v2714_v57, inf }
  0xed   : > { %v2067_v1 = vpop.eup %2066  ;;  %533 = vst [vmem:[#allocation2 + $0x8] sm:$0xff] %v525_v22  ;;  %v503_v5 = vmul.f32 %v2065_v23, %v2508_v8  ;;  %v444_v58 = vsel %vm443_vm5, %v2664_v15, %v442_v2  ;;  %v467_v3 = vand.u32 2147483648, %v2714_v57  ;;  %vm466_vm0 = vcmp.eq.f32.partialorder %v2714_v57, 0.0 }
  0xee   : > { %v2069_v32 = vpop.eup %2068  ;;  %532 = vst [vmem:[#allocation2] sm:$0xff] %v524_v26  ;;  %v501_v33 = vmul.f32 %v2067_v1, %v2513_v9  ;;  %v447_v34 = vsel %vm445_vm6, %v446_v27, %v444_v58  ;;  %v437_v35 = vsel %vm436_vm7, %v2666_v18, %v435_v30 }
  0xef   : > { %v487_v37 = vmax.f32 %v447_v34, 1e-12  ;;  %v440_v8 = vsel %vm438_vm8, %v439_v31, %v437_v35  ;;  %v456_v40 = vmul.f32 %v2069_v32, %v2683_v36 }
  0xf0   : > { %v2071_v38 = vpop.eup %2070  ;;  %v526_v39 = vpack.c.bf16 %v503_v5, %v501_v33  ;;  %v486_v41 = vmax.f32 %v440_v8, 1e-12 }
  0xf1   : > { %v2073_v46 = vpop.eup %2072  ;;  %v507_v9 = vmul.f32 %v2071_v38, %v2522_v12  ;;  %2084 = vrcp.f32 %v487_v37  ;;  %v458_v15 = vsel %vm457_vm9, %v2683_v36, %v456_v40 }
  0xf2   : > { %v2075_v18 = vpop.eup %2074  ;;  %534 = vst [vmem:[#allocation2 + $0x10] sm:$0xff] %v526_v39  ;;  %v505_v47 = vmul.f32 %v2073_v46, %v2527_v13  ;;  %2086 = vrcp.f32 %v486_v41  ;;  %v461_v48 = vsel %vm459_vm10, %v460_v43, %v458_v15 }
  0xf3   : > { %v2077_v49 = vpop.eup %2076  ;;  %v489_v50 = vmax.f32 %v461_v48, 1e-12  ;;  %v449_v51 = vmul.f32 %v2075_v18, %v2693_v42 }
  0xf4   : > { %v2079_v12 = vpop.eup %2078  ;;  %v527_v52 = vpack.c.bf16 %v507_v9, %v505_v47  ;;  %v470_v36 = vmul.f32 %v2077_v49, %v2707_v45 }
  0xf5   : > { %v2081_v44 = vpop.eup %2080  ;;  %2088 = vrcp.f32 %v489_v50  ;;  %v451_v13 = vsel %vm450_vm11, %v2693_v42, %v449_v51  ;;  %v511_v55 = vmul.f32 %v2079_v12, %v2536_v16 }
  0xf6   : > { %535 = vst [vmem:[#allocation2 + $0x18] sm:$0xff] %v527_v52  ;;  %v454_v56 = vsel %vm452_vm12, %v453_v53, %v451_v13  ;;  %v472_v59 = vsel %vm471_vm13, %v2707_v45, %v470_v36  ;;  %v463_v60 = vmul.f32 %v2081_v44, %v2714_v57  ;;  %v2083_v61 = vpop.eup %2082 }
  0xf7   : > { %v488_v62 = vmax.f32 %v454_v56, 1e-12  ;;  %v475_v63 = vsel %vm473_vm14, %v474_v54, %v472_v59  ;;  %v509_v42 = vmul.f32 %v2083_v61, %v2541_v17 }
  0xf8   : > { %v491_v4 = vmax.f32 %v475_v63, 1e-12  ;;  %v465_v6 = vsel %vm464_vm15, %v2714_v57, %v463_v60 }
  0xf9   : > { %2090 = vrcp.f32 %v488_v62  ;;  %v468_v16 = vsel %vm466_vm0, %v467_v3, %v465_v6  ;;  %v528_v7 = vpack.c.bf16 %v511_v55, %v509_v42 }
  0xfa   : > { %2092 = vrcp.f32 %v491_v4  ;;  %v490_v45 = vmax.f32 %v468_v16, 1e-12 }
  0xfb   : > { %v2085_v10 = vpop.eup %2084  ;;  %536 = vst [vmem:[#allocation2 + $0x20] sm:$0xff] %v528_v7 }
  0xfc   : > { %v2087_v11 = vpop.eup %2086  ;;  %v515_v14 = vmul.f32 %v2085_v10, %v2550_v20  ;;  %2094 = vrcp.f32 %v490_v45 }
  0xfd   : > { %v513_v19 = vmul.f32 %v2087_v11, %v2555_v21 }
  0xff   : > { %v2089_v22 = vpop.eup %2088  ;;  %v529_v17 = vpack.c.bf16 %v515_v14, %v513_v19 }
 0x100   : > { %v519_v0 = vmul.f32 %v2089_v22, %v2564_v24 }
 0x101   : > { %537 = vst [vmem:[#allocation2 + $0x28] sm:$0xff] %v529_v17 }
 0x103   : > { %v2091_v2 = vpop.eup %2090 }
 0x104   : > { %v2093_v57 = vpop.eup %2092  ;;  %v517_v23 = vmul.f32 %v2091_v2, %v2569_v25 }
 0x105   : > { %v523_v26 = vmul.f32 %v2093_v57, %v2578_v28 }
 0x106   : > { %v2095_v27 = vpop.eup %2094  ;;  %v530_v30 = vpack.c.bf16 %v519_v0, %v517_v23 }
 0x107   : > { %v521_v1 = vmul.f32 %v2095_v27, %v2583_v29 }
 0x108   : > { %538 = vst [vmem:[#allocation2 + $0x30] sm:$0xff] %v530_v30 }
 0x109   : > { %v531_v20 = vpack.c.bf16 %v523_v26, %v521_v1 }
 0x10b   : > { %539 = vst [vmem:[#allocation2 + $0x38] sm:$0xff] %v531_v20 }
 0x10c PF: > { %v2098_v21 = vld [vmem:[%s2463_s14 + $0x4] ss:$8 sps:$4 sm:$0xff]   ;;  %v2100_v24 = vld [vmem:[%s2463_s14] ss:$8 sps:$4 sm:$0xff]   ;;  %v2338_v5 = vmov 0   ;;  %v852_v34 = vld [vmem:[%s3903_s3 + $0x10] sm:$0xff]  ;;  %v808_v4 = vlaneseq }
 0x10d   : > { %725 = vmatprep.mubr.bf16.mxu0 %v2338_v5  ;;  %765 = vmatprep.mubr.bf16.mxu1 %v2338_v5  ;;  %v2101_v25 = vld [vmem:[%s2463_s14 + $0x14] ss:$8 sps:$4 sm:$0xff]   ;;  %v2103_v28 = vld [vmem:[%s2463_s14 + $0x10] ss:$8 sps:$4 sm:$0xff]   ;;  %v2104_v29 = vld [vmem:[%s2463_s14 + $0x24] ss:$8 sps:$4 sm:$0xff]  }
 0x10e   : > { %693 = vmatprep.subr.bf16.mxu0 %v2098_v21  ;;  %1955 = vmatprep.subr.bf16.mxu1 %v2098_v21  ;;  %v2106_v58 = vld [vmem:[%s2463_s14 + $0x20] ss:$8 sps:$4 sm:$0xff]   ;;  %v2107_v31 = vld [vmem:[%s2463_s14 + $0x34] ss:$8 sps:$4 sm:$0xff]   ;;  %v2109_v32 = vld [vmem:[%s2463_s14 + $0x30] ss:$8 sps:$4 sm:$0xff]  }
 0x10f   : > { %694 = vmatpush1.bf16.msra.mxu0 %v2100_v24  ;;  %1963 = vmatpush1.bf16.msra.mxu1 %v2100_v24  ;;  %v2110_v33 = vld [vmem:[%s2463_s14 + $0x44] ss:$8 sps:$4 sm:$0xff]   ;;  %v2112_v37 = vld [vmem:[%s2463_s14 + $0x40] ss:$8 sps:$4 sm:$0xff]   ;;  %v853_v8 = vld [vmem:[%s3903_s3 + $0x18] sm:$0xff]  ;;  %v809_v7 = vshrl.u32 %v808_v4, 7 }
 0x110   : > { %695 = vmatprep.subr.bf16.mxu0 %v2101_v25  ;;  %1956 = vmatprep.subr.bf16.mxu1 %v2101_v25  ;;  %v850_v35 = vld [vmem:[%s3903_s3] sm:$0xff]  ;;  %v2113_v40 = vld [vmem:[%s2463_s14 + $0x54] ss:$8 sps:$4 sm:$0xff]   ;;  %v851_v38 = vld [vmem:[%s3903_s3 + $0x8] sm:$0xff]  ;;  %v868_v45 = vand.u32 127, %v808_v4  ;;  %s1916_s9 = sshll.u32 %s2322_s18, 8 }
 0x111   : > { %2097 = vset.pattern.permute.xlu1 %v2338_v5  ;;  %2096 = vset.pattern.permute.xlu0 %v2338_v5  ;;  %v2115_v39 = vld [vmem:[%s2463_s14 + $0x50] ss:$8 sps:$4 sm:$0xff]   ;;  %v855_v41 = vld [vmem:[%s3903_s3 + $0x28] sm:$0xff]  ;;  %v854_v46 = vld [vmem:[%s3903_s3 + $0x20] sm:$0xff]  ;;  %v810_v14 = vsub.s32 0, %v809_v7  ;;  %v814_v17 = vsub.s32 1, %v809_v7  ;;  %v870_v0 = vstv %s1916_s9 }
 0x112   : > { %880 = vperm.xlu1 %2097, %v852_v34   ;;  %874 = vperm.xlu0 %2096, %v850_v35   ;;  %v2116_v43 = vld [vmem:[%s2463_s14 + $0x64] ss:$8 sps:$4 sm:$0xff]   ;;  %v2118_v9 = vld [vmem:[%s2463_s14 + $0x60] ss:$8 sps:$4 sm:$0xff]   ;;  %v857_v15 = vld [vmem:[%s3903_s3 + $0x38] sm:$0xff]  ;;  %v869_v19 = vadd.s32 128, %v868_v45  ;;  %v2867_v57 = vadd.s32 %v870_v0, %v868_v45 }
 0x113   : > { %696 = vmatpush1.bf16.msra.mxu0 %v2103_v28  ;;  %1964 = vmatpush1.bf16.msra.mxu1 %v2103_v28  ;;  %v2119_v18 = vld [vmem:[%s2463_s14 + $0x74] ss:$8 sps:$4 sm:$0xff]   ;;  %v2121_v48 = vld [vmem:[%s2463_s14 + $0x70] ss:$8 sps:$4 sm:$0xff]   ;;  %v859_v49 = vld [vmem:[%s3903_s3 + $0x48] sm:$0xff]  ;;  %p1949_p7 = scmp.ne.s32.totalorder %s2322_s18, 3 }
 0x114   : > { %697 = vmatprep.subr.bf16.mxu0 %v2104_v29  ;;  %1957 = vmatprep.subr.bf16.mxu1 %v2104_v29  ;;  %v856_v47 = vld [vmem:[%s3903_s3 + $0x30] sm:$0xff]  ;;  %v858_v50 = vld [vmem:[%s3903_s3 + $0x40] sm:$0xff]  ;;  %v861_v52 = vld [vmem:[%s3903_s3 + $0x58] sm:$0xff]  ;;  %v2869_v23 = vadd.s32 %v870_v0, %v869_v19  ;;  %vm1049_vm1 = vcmp.lt.s32.totalorder %v2867_v57, 1000 }
 0x115   : > { %v589_v51 = vld [vmem:[#allocation2] sm:$0xff]  ;;  %v860_v53 = vld [vmem:[%s3903_s3 + $0x50] sm:$0xff]  ;;  %v863_v36 = vld [vmem:[%s3903_s3 + $0x68] sm:$0xff] }
 0x116   : > { %883 = vperm.xlu1 %2097, %v853_v8   ;;  %877 = vperm.xlu0 %2096, %v851_v38   ;;  %v593_v12 = vld [vmem:[#allocation2 + $0x20] sm:$0xff]  ;;  %v590_v13 = vld [vmem:[#allocation2 + $0x8] sm:$0xff]  ;;  %v865_v55 = vld [vmem:[%s3903_s3 + $0x78] sm:$0xff]  ;;  %vm1050_vm2 = vcmp.lt.s32.totalorder %v2869_v23, 1000 }
 0x117   : > { %698 = vmatpush1.bf16.msra.mxu0 %v2106_v58  ;;  %1965 = vmatpush1.bf16.msra.mxu1 %v2106_v58  ;;  %v862_v44 = vld [vmem:[%s3903_s3 + $0x60] sm:$0xff]  ;;  %v594_v54 = vld [vmem:[#allocation2 + $0x28] sm:$0xff]  ;;  %v864_v56 = vld [vmem:[%s3903_s3 + $0x70] sm:$0xff] }
 0x118   : > { %699 = vmatprep.subr.bf16.mxu0 %v2107_v31  ;;  %1958 = vmatprep.subr.bf16.mxu1 %v2107_v31  ;;  %v591_v59 = vld [vmem:[#allocation2 + $0x10] sm:$0xff]  ;;  %v592_v61 = vld [vmem:[#allocation2 + $0x18] sm:$0xff]  ;;  %v806_v22 = vld [vmem:[%s281_s10] sm:$0x3] }
 0x119   : > { %v595_v60 = vld [vmem:[#allocation2 + $0x30] sm:$0xff]  ;;  %v596_v62 = vld [vmem:[#allocation2 + $0x38] sm:$0xff]  ;;  %v2865_v2 = vrot.slane %v806_v22, %v810_v14  ;;  %v2871_v26 = vrot.slane %v806_v22, %v814_v17 }
 0x11a   : > { %889 = vperm.xlu1 %2097, %v855_v41   ;;  %886 = vperm.xlu0 %2096, %v854_v46  }
 0x11b   : > { %700 = vmatpush1.bf16.msra.mxu0 %v2109_v32  ;;  %1966 = vmatpush1.bf16.msra.mxu1 %v2109_v32 }
 0x11c   : > { %701 = vmatprep.subr.bf16.mxu0 %v2110_v33  ;;  %1959 = vmatprep.subr.bf16.mxu1 %v2110_v33 }
 0x11e   : > { %895 = vperm.xlu1 %2097, %v857_v15   ;;  %892 = vperm.xlu0 %2096, %v856_v47  }
 0x11f   : > { %702 = vmatpush1.bf16.msra.mxu0 %v2112_v37  ;;  %1967 = vmatpush1.bf16.msra.mxu1 %v2112_v37 }
 0x120   : > { %703 = vmatprep.subr.bf16.mxu0 %v2113_v40  ;;  %1960 = vmatprep.subr.bf16.mxu1 %v2113_v40 }
 0x122   : > { %901 = vperm.xlu1 %2097, %v859_v49   ;;  %898 = vperm.xlu0 %2096, %v858_v50  }
 0x123   : > { %704 = vmatpush1.bf16.msra.mxu0 %v2115_v39  ;;  %1968 = vmatpush1.bf16.msra.mxu1 %v2115_v39 }
 0x124   : > { %705 = vmatprep.subr.bf16.mxu0 %v2116_v43  ;;  %1961 = vmatprep.subr.bf16.mxu1 %v2116_v43 }
 0x126   : > { %907 = vperm.xlu1 %2097, %v861_v52   ;;  %904 = vperm.xlu0 %2096, %v860_v53  }
 0x127   : > { %706 = vmatpush1.bf16.msra.mxu0 %v2118_v9  ;;  %1969 = vmatpush1.bf16.msra.mxu1 %v2118_v9 }
 0x128   : > { %707 = vmatprep.subr.bf16.mxu0 %v2119_v18  ;;  %1962 = vmatprep.subr.bf16.mxu1 %v2119_v18 }
 0x12a   : > { %913 = vperm.xlu1 %2097, %v863_v36   ;;  %910 = vperm.xlu0 %2096, %v862_v44  }
 0x12b   : > { %708 = vmatpush1.bf16.msra.mxu0 %v2121_v48  ;;  %1970 = vmatpush1.bf16.msra.mxu1 %v2121_v48 }
 0x12e   : > { %726 = vmatmul.mubr.bf16.vlgmr.msra.gmra.mrb[0].mxu0 %v589_v51  ;;  %766 = vmatmul.mubr.bf16.vlgmr.msra.gmra.mrb[0].mxu1 %v593_v12 }
 0x12f   : > { %735 = vmatprep.mubr.bf16.mxu0 %v2338_v5  ;;  %775 = vmatprep.mubr.bf16.mxu1 %v2338_v5 }
 0x130   : > { %919 = vperm.xlu1 %2097, %v865_v55   ;;  %916 = vperm.xlu0 %2096, %v864_v56  }
 0x136   : > { %736 = vmatmul.mubr.bf16.gmra.mrb[4].mxu0 %v590_v13  ;;  %776 = vmatmul.mubr.bf16.gmra.mrb[4].mxu1 %v594_v54 }
 0x137   : > { %745 = vmatprep.mubr.bf16.mxu0 %v2338_v5  ;;  %785 = vmatprep.mubr.bf16.mxu1 %v2338_v5 }
 0x13e   : > { %746 = vmatmul.mubr.bf16.gmra.mrb[8].mxu0 %v591_v59  ;;  %786 = vmatmul.mubr.bf16.gmra.mrb[8].mxu1 %v595_v60 }
 0x13f   : > { %755 = vmatprep.mubr.bf16.mxu0 %v2338_v5  ;;  %795 = vmatprep.mubr.bf16.mxu1 %v2338_v5 }
 0x146   : > { %756 = vmatmul.mubr.bf16.gmra.mrb[12].mxu0 %v592_v61  ;;  %796 = vmatmul.mubr.bf16.gmra.mrb[12].mxu1 %v596_v62 }
 0x191   : > { %v2845_v63 = vpop.permute.xlu0 %874  ;;  %v2847_v3 = vpop.permute.xlu1 %880 }
 0x192   : > { %vm3922_vm3 = vcmp.eq.s32.totalorder %v2867_v57, %v2845_v63  ;;  %vm3921_vm4 = vcmp.eq.s32.totalorder %v2869_v23, %v2845_v63  ;;  %vm3916_vm13 = vcmp.eq.s32.totalorder %v2867_v57, %v2847_v3  ;;  %vm3915_vm14 = vcmp.eq.s32.totalorder %v2869_v23, %v2847_v3 }
 0x195   : > { %v2849_v42 = vpop.permute.xlu0 %877  ;;  %v2851_v6 = vpop.permute.xlu1 %883 }
 0x196   : > { %vm3932_vm9 = vcmp.eq.s32.totalorder %v2867_v57, %v2849_v42  ;;  %vm3931_vm10 = vcmp.eq.s32.totalorder %v2869_v23, %v2849_v42  ;;  %vm3930_vm15 = vcmp.eq.s32.totalorder %v2867_v57, %v2851_v6  ;;  %vm3925_vm0 = vcmp.eq.s32.totalorder %v2869_v23, %v2851_v6 }
 0x199   : > { %v2853_v16 = vpop.permute.xlu0 %886  ;;  %v2856_v10 = vpop.permute.xlu1 %889 }
 0x19d   : > { %v2858_v11 = vpop.permute.xlu0 %892  ;;  %v2873_v27 = vpop.permute.xlu1 %895 }
 0x1a1   : > { %v2875_v30 = vpop.permute.xlu0 %898  ;;  %v2895_v43 = vpop.permute.xlu1 %901 }
 0x1a2   : > { %3960 = vst [vmem:[#allocation9_spill] sm:$0xff] %v2875_v30  ;;  %vm3908_vm5 = vcmp.eq.s32.totalorder %v2867_v57, %v2875_v30  ;;  %vm3905_vm6 = vcmp.eq.s32.totalorder %v2869_v23, %v2875_v30  ;;  %vm3914_vm7 = vcmp.eq.s32.totalorder %v2867_v57, %v2895_v43  ;;  %vm3909_vm8 = vcmp.eq.s32.totalorder %v2869_v23, %v2895_v43 }
 0x201   : > { %v727_v1 = vpop.f32.mrb[0].mxu0  ;;  %v767_v20 = vpop.f32.mrb[0].mxu1 }
 0x202   : > { %v818_v21 = vmul.f32 %v2865_v2, %v727_v1  ;;  %v834_v24 = vmul.f32 %v2865_v2, %v767_v20  ;;  %v729_v5 = vpop.f32.mrb[1].mxu0  ;;  %v769_v25 = vpop.f32.mrb[1].mxu1 }
 0x203   : > { %v819_v28 = vmul.f32 %v2871_v26, %v729_v5  ;;  %v835_v29 = vmul.f32 %v2871_v26, %v769_v25  ;;  %v731_v58 = vpop.f32.mrb[2].mxu0  ;;  %v771_v31 = vpop.f32.mrb[2].mxu1 }
 0x204   : > { %v953_v32 = vmul.f32 30.0, %v818_v21  ;;  %v969_v33 = vmul.f32 30.0, %v834_v24  ;;  %v820_v34 = vmul.f32 %v2865_v2, %v731_v58  ;;  %v836_v35 = vmul.f32 %v2865_v2, %v771_v31  ;;  %v733_v37 = vpop.f32.mrb[3].mxu0  ;;  %v773_v8 = vpop.f32.mrb[3].mxu1 }
 0x205   : > { %v954_v40 = vmul.f32 30.0, %v819_v28  ;;  %v970_v38 = vmul.f32 30.0, %v835_v29  ;;  %v821_v39 = vmul.f32 %v2871_v26, %v733_v37  ;;  %v837_v41 = vmul.f32 %v2871_v26, %v773_v8 }
 0x206   : > { %v1917_v46 = vadd.f32 -10.5, %v953_v32  ;;  %v1933_v9 = vadd.f32 -10.5, %v969_v33  ;;  %v2897_v15 = vmul.f32 30.0, %v820_v34  ;;  %v971_v18 = vmul.f32 30.0, %v836_v35 }
 0x207   : > { %v1918_v47 = vadd.f32 -10.5, %v954_v40  ;;  %v1934_v48 = vadd.f32 -10.5, %v970_v38  ;;  %v2901_v49 = vmul.f32 30.0, %v821_v39  ;;  %v972_v50 = vmul.f32 30.0, %v837_v41  ;;  %v2977_v41 = vpop.permute.xlu1 %907 }
 0x208   : > { %v2906_v51 = vadd.f32 -10.5, %v2897_v15  ;;  %v1935_v12 = vadd.f32 -10.5, %v971_v18  ;;  %v1033_v52 = vsel %vm3908_vm5, %v1933_v9, %v969_v33  ;;  %v1017_v53 = vsel %vm3922_vm3, %v1917_v46, %v953_v32  ;;  %v2957_v32 = vpop.permute.xlu0 %904 }
 0x209   : > { %v2917_v36 = vadd.f32 -10.5, %v2901_v49  ;;  %v1936_v44 = vadd.f32 -10.5, %v972_v50  ;;  %v737_v13 = vpop.f32.mrb[4].mxu0  ;;  %v777_v54 = vpop.f32.mrb[4].mxu1  ;;  %v1034_v55 = vsel %vm3905_vm6, %v1934_v48, %v970_v38  ;;  %v2924_v56 = vsel %vm1049_vm1, %v1033_v52, -1e+30 }
 0x20a   : > { %3961 = vst [vmem:[#allocation10_spill] sm:$0xff] %v2924_v56  ;;  %v822_v59 = vmul.f32 %v2865_v2, %v737_v13  ;;  %v838_v60 = vmul.f32 %v2865_v2, %v777_v54  ;;  %v739_v61 = vpop.f32.mrb[5].mxu0  ;;  %v779_v62 = vpop.f32.mrb[5].mxu1  ;;  %v2932_v4 = vsel %vm1050_vm2, %v1034_v55, -1e+30  ;;  %v1018_v7 = vsel %vm3921_vm4, %v1918_v47, %v954_v40  ;;  %3963 = vst [vmem:[#allocation12_spill] sm:$0xff] %v2957_v32 }
 0x20b   : > { %3962 = vst [vmem:[#allocation11_spill] sm:$0xff] %v2932_v4  ;;  %v823_v45 = vmul.f32 %v2871_v26, %v739_v61  ;;  %v839_v14 = vmul.f32 %v2871_v26, %v779_v62  ;;  %v741_v19 = vpop.f32.mrb[6].mxu0  ;;  %v781_v22 = vpop.f32.mrb[6].mxu1  ;;  %v1123_v17 = vmax.f32 %v2924_v56, %v2932_v4  ;;  %v2943_v0 = vsel %vm1049_vm1, %v1017_v53, -1e+30 }
 0x20c   : > { %v2945_v1 = vmul.f32 30.0, %v822_v59  ;;  %v2947_v20 = vmul.f32 30.0, %v838_v60  ;;  %v824_v21 = vmul.f32 %v2865_v2, %v741_v19  ;;  %v840_v24 = vmul.f32 %v2865_v2, %v781_v22  ;;  %v743_v5 = vpop.f32.mrb[7].mxu0  ;;  %v783_v25 = vpop.f32.mrb[7].mxu1 }
 0x20d   : > { %v2951_v28 = vmul.f32 30.0, %v823_v45  ;;  %v2953_v29 = vmul.f32 30.0, %v839_v14  ;;  %v825_v58 = vmul.f32 %v2871_v26, %v743_v5  ;;  %v841_v31 = vmul.f32 %v2871_v26, %v783_v25  ;;  %1124 = vmax.xlane.f32.xlu1 %v1123_v17 }
 0x20e   : > { %v2960_v33 = vadd.f32 -10.5, %v2945_v1  ;;  %v1937_v34 = vadd.f32 -10.5, %v2947_v20  ;;  %v2963_v35 = vmul.f32 30.0, %v824_v21  ;;  %v2965_v37 = vmul.f32 30.0, %v840_v24 }
 0x20f   : > { %vm3906_vm11 = vcmp.eq.s32.totalorder %v2867_v57, %v2957_v32  ;;  %v2970_v8 = vadd.f32 -10.5, %v2951_v28  ;;  %v1938_v40 = vadd.f32 -10.5, %v2953_v29  ;;  %v2973_v38 = vmul.f32 30.0, %v825_v58 }
 0x210   : > { %v2975_v39 = vmul.f32 30.0, %v841_v31  ;;  %vm3907_vm12 = vcmp.eq.s32.totalorder %v2869_v23, %v2957_v32  ;;  %v2982_v46 = vadd.f32 -10.5, %v2963_v35  ;;  %v2985_v9 = vadd.f32 -10.5, %v2965_v37 }
 0x211   : > { %v2989_v47 = vsel %vm1050_vm2, %v1018_v7, -1e+30  ;;  %v1035_v48 = vsel %vm3914_vm7, %v1935_v12, %v971_v18  ;;  %v2997_v52 = vadd.f32 -10.5, %v2973_v38  ;;  %v787_v54 = vpop.f32.mrb[8].mxu1  ;;  %v1036_v55 = vsel %vm3909_vm8, %v1936_v44, %v972_v50  ;;  %v747_v59 = vpop.f32.mrb[8].mxu0 }
 0x212   : > { %v3000_v53 = vadd.f32 -10.5, %v2975_v39  ;;  %v1099_v13 = vmax.f32 %v2943_v0, %v2989_v47  ;;  %v842_v18 = vmul.f32 %v2865_v2, %v787_v54  ;;  %v3012_v12 = vsel %vm1049_vm1, %v1035_v48, -1e+30  ;;  %v749_v44 = vpop.f32.mrb[9].mxu0  ;;  %v789_v61 = vpop.f32.mrb[9].mxu1 }
 0x213   : > { %v3016_v60 = vsel %vm1050_vm2, %v1036_v55, -1e+30  ;;  %v1019_v50 = vsel %vm3932_vm9, %v2906_v51, %v2897_v15  ;;  %v1020_v7 = vsel %vm3931_vm10, %v2917_v36, %v2901_v49  ;;  %v826_v51 = vmul.f32 %v2865_v2, %v747_v59  ;;  %v751_v45 = vpop.f32.mrb[10].mxu0  ;;  %v791_v14 = vpop.f32.mrb[10].mxu1 }
 0x214   : > { %3964 = vst [vmem:[#allocation13_spill] sm:$0xff] %v3016_v60  ;;  %1100 = vmax.xlane.f32.xlu0 %v1099_v13  ;;  %v1126_v62 = vmax.f32 %v3012_v12, %v3016_v60  ;;  %v3036_v15 = vsel %vm1049_vm1, %v1019_v50, -1e+30  ;;  %v3039_v19 = vmul.f32 30.0, %v842_v18  ;;  %v3043_v22 = vsel %vm1050_vm2, %v1020_v7, -1e+30 }
 0x215   : > { %v827_v17 = vmul.f32 %v2871_v26, %v749_v44  ;;  %v843_v21 = vmul.f32 %v2871_v26, %v789_v61  ;;  %v753_v24 = vpop.f32.mrb[11].mxu0  ;;  %v793_v49 = vpop.f32.mrb[11].mxu1  ;;  %v1102_v36 = vmax.f32 %v3036_v15, %v3043_v22  ;;  %v3049_v5 = vmul.f32 30.0, %v826_v51 }
 0x216   : > { %v828_v25 = vmul.f32 %v2865_v2, %v751_v45  ;;  %v844_v58 = vmul.f32 %v2865_v2, %v791_v14  ;;  %v3054_v31 = vadd.f32 -10.5, %v3039_v19  ;;  %v829_v54 = vmul.f32 %v2871_v26, %v753_v24  ;;  %v3069_v44 = vpop.permute.xlu0 %910 }
 0x217   : > { %v3056_v48 = vmul.f32 30.0, %v827_v17  ;;  %v3058_v13 = vmul.f32 30.0, %v843_v21  ;;  %1103 = vmax.xlane.f32.xlu1 %v1102_v36  ;;  %v3062_v55 = vadd.f32 -10.5, %v3049_v5  ;;  %v845_v50 = vmul.f32 %v2871_v26, %v793_v49 }
 0x218   : > { %1127 = vmax.xlane.f32.xlu0 %v1126_v62  ;;  %v3064_v59 = vmul.f32 30.0, %v828_v25  ;;  %v3066_v18 = vmul.f32 30.0, %v844_v58  ;;  %v3077_v51 = vmul.f32 30.0, %v829_v54  ;;  %v1037_v62 = vsel %vm3906_vm11, %v1937_v34, %v2947_v20  ;;  %v3099_v20 = vpop.permute.xlu1 %913 }
 0x219   : > { %v3072_v61 = vadd.f32 -10.5, %v3056_v48  ;;  %v3075_v7 = vadd.f32 -10.5, %v3058_v13  ;;  %vm943_vm6 = vcmp.eq.s32.totalorder %v2867_v57, %v2977_v41  ;;  %v3091_v17 = vmul.f32 30.0, %v845_v50  ;;  %v797_v24 = vpop.f32.mrb[12].mxu1  ;;  %v757_v49 = vpop.f32.mrb[12].mxu0 }
 0x21a   : > { %v3086_v45 = vadd.f32 -10.5, %v3064_v59  ;;  %v3089_v14 = vadd.f32 -10.5, %v3066_v18  ;;  %v1038_v21 = vsel %vm3907_vm12, %v1938_v40, %v2953_v29  ;;  %vm944_vm11 = vcmp.eq.s32.totalorder %v2869_v23, %v2977_v41  ;;  %v759_v40 = vpop.f32.mrb[13].mxu0 }
 0x21b   : > { %v3102_v34 = vadd.f32 -10.5, %v3077_v51  ;;  %v3106_v36 = vsel %vm1049_vm1, %v1037_v62, -1e+30  ;;  %v3110_v25 = vsel %vm1050_vm2, %v1038_v21, -1e+30  ;;  %v1021_v29 = vsel %vm3916_vm13, %v2960_v33, %v2945_v1  ;;  %v799_v1 = vpop.f32.mrb[13].mxu1 }
 0x21c   : > { %3965 = vst [vmem:[#allocation14_spill] sm:$0xff] %v3106_v36  ;;  %3966 = vst [vmem:[#allocation15_spill] sm:$0xff] %v3110_v25  ;;  %vm929_vm12 = vcmp.eq.s32.totalorder %v2867_v57, %v2853_v16  ;;  %v3120_v58 = vadd.f32 -10.5, %v3091_v17  ;;  %v1129_v54 = vmax.f32 %v3106_v36, %v3110_v25  ;;  %v1022_v50 = vsel %vm3915_vm14, %v2970_v8, %v2951_v28  ;;  %v761_v33 = vpop.f32.mrb[14].mxu0 }
 0x21d   : > { %v3131_v62 = vsel %vm1049_vm1, %v1021_v29, -1e+30  ;;  %vm930_vm5 = vcmp.eq.s32.totalorder %v2869_v23, %v2853_v16  ;;  %vm3934_vm8 = vcmp.eq.s32.totalorder %v2867_v57, %v3069_v44  ;;  %v3139_v21 = vsel %vm1050_vm2, %v1022_v50, -1e+30  ;;  %v801_v29 = vpop.f32.mrb[14].mxu1  ;;  %v763_v32 = vpop.f32.mrb[15].mxu0 }
 0x21e   : > { %v846_v25 = vmul.f32 %v2865_v2, %v797_v24  ;;  %v1023_v28 = vsel %vm3930_vm15, %v2982_v46, %v2963_v35  ;;  %v1024_v8 = vsel %vm3925_vm0, %v2997_v52, %v2973_v38  ;;  %vm931_vm7 = vcmp.eq.s32.totalorder %v2867_v57, %v2856_v10  ;;  %1130 = vmax.xlane.f32.xlu1 %v1129_v54  ;;  %v803_v52 = vpop.f32.mrb[15].mxu1  ;;  %v3169_v50 = vpop.permute.xlu0 %916 }
 0x21f   : > { %vm3933_vm14 = vcmp.eq.s32.totalorder %v2869_v23, %v3069_v44  ;;  %v1105_v24 = vmax.f32 %v3131_v62, %v3139_v21  ;;  %v3160_v35 = vsel %vm1049_vm1, %v1023_v28, -1e+30  ;;  %v3164_v46 = vsel %vm1050_vm2, %v1024_v8, -1e+30 }
 0x220   : > { %v830_v38 = vmul.f32 %v2865_v2, %v757_v49  ;;  %vm932_vm13 = vcmp.eq.s32.totalorder %v2869_v23, %v2856_v10  ;;  %v3171_v54 = vmul.f32 30.0, %v846_v25  ;;  %v1108_v36 = vmax.f32 %v3160_v35, %v3164_v46 }
 0x221   : > { %v831_v28 = vmul.f32 %v2871_v26, %v759_v40  ;;  %v847_v4 = vmul.f32 %v2871_v26, %v799_v1  ;;  %vm947_vm4 = vcmp.eq.s32.totalorder %v2867_v57, %v3099_v20  ;;  %vm3935_vm3 = vcmp.eq.s32.totalorder %v2869_v23, %v3099_v20  ;;  %1106 = vmax.xlane.f32.xlu0 %v1105_v24  ;;  %v3190_v24 = vpop.permute.xlu1 %919 }
 0x222   : > { %v965_v49 = vmul.f32 30.0, %v830_v38  ;;  %v832_v8 = vmul.f32 %v2865_v2, %v761_v33  ;;  %v848_v25 = vmul.f32 %v2865_v2, %v801_v29  ;;  %v833_v30 = vmul.f32 %v2871_v26, %v763_v32 }
 0x223   : > { %v1945_v40 = vadd.f32 -10.5, %v3171_v54  ;;  %v966_v1 = vmul.f32 30.0, %v831_v28  ;;  %v982_v56 = vmul.f32 30.0, %v847_v4  ;;  %v849_v60 = vmul.f32 %v2871_v26, %v803_v52 }
 0x224   : > { %vm934_vm15 = vcmp.eq.s32.totalorder %v2869_v23, %v2858_v11  ;;  %v1929_v2 = vadd.f32 -10.5, %v965_v49  ;;  %v967_v33 = vmul.f32 30.0, %v832_v8  ;;  %v983_v32 = vmul.f32 30.0, %v848_v25 }
 0x225   : > { %v968_v29 = vmul.f32 30.0, %v833_v30  ;;  %v1930_v4 = vadd.f32 -10.5, %v966_v1  ;;  %v1946_v26 = vadd.f32 -10.5, %v982_v56  ;;  %v984_v38 = vmul.f32 30.0, %v849_v60  ;;  %1109 = vmax.xlane.f32.xlu0 %v1108_v36 }
 0x226   : > { %v1039_v52 = vsel %vm943_vm6, %v2985_v9, %v2965_v37  ;;  %vm936_vm10 = vcmp.eq.s32.totalorder %v2869_v23, %v2873_v27  ;;  %v1931_v30 = vadd.f32 -10.5, %v967_v33  ;;  %v1947_v28 = vadd.f32 -10.5, %v983_v32 }
 0x227   : > { %v1932_v8 = vadd.f32 -10.5, %v968_v29  ;;  %v1040_v25 = vsel %vm944_vm11, %v3000_v53, %v2975_v39  ;;  %vm951_vm9 = vcmp.eq.s32.totalorder %v2867_v57, %v3190_v24  ;;  %vm952_vm0 = vcmp.eq.s32.totalorder %v2869_v23, %v3190_v24 }
 0x228   : > { %v1948_v37 = vadd.f32 -10.5, %v984_v38  ;;  %v3216_v9 = vsel %vm1049_vm1, %v1039_v52, -1e+30  ;;  %v3220_v60 = vsel %vm1050_vm2, %v1040_v25, -1e+30  ;;  %v1025_v39 = vsel %vm929_vm12, %v3062_v55, %v3049_v5 }
 0x229   : > { %v1132_v53 = vmax.f32 %v3216_v9, %v3220_v60  ;;  %v1026_v36 = vsel %vm930_vm5, %v3072_v61, %v3056_v48  ;;  %v3236_v52 = vsel %vm1049_vm1, %v1025_v39, -1e+30  ;;  %v1041_v25 = vsel %vm3934_vm8, %v3054_v31, %v3039_v19 }
 0x22a   : > { %v3245_v5 = vsel %vm1050_vm2, %v1026_v36, -1e+30  ;;  %v1042_v48 = vsel %vm3933_vm14, %v3075_v7, %v3058_v13  ;;  %v3254_v55 = vsel %vm1049_vm1, %v1041_v25, -1e+30  ;;  %v1027_v19 = vsel %vm931_vm7, %v3086_v45, %v3064_v59 }
 0x22b   : > { %1133 = vmax.xlane.f32.xlu0 %v1132_v53  ;;  %v1111_v31 = vmax.f32 %v3236_v52, %v3245_v5  ;;  %v3265_v61 = vsel %vm1050_vm2, %v1042_v48, -1e+30  ;;  %v1028_v13 = vsel %vm932_vm13, %v3102_v34, %v3077_v51  ;;  %v3274_v7 = vsel %vm1049_vm1, %v1027_v19, -1e+30 }
 0x22c   : > { %v1135_v59 = vmax.f32 %v3254_v55, %v3265_v61  ;;  %v3280_v45 = vsel %vm1050_vm2, %v1028_v13, -1e+30  ;;  %v1043_v39 = vsel %vm947_vm4, %v3089_v14, %v3066_v18  ;;  %v1044_v51 = vsel %vm3935_vm3, %v3120_v58, %v3091_v17 }
 0x22d   : > { %1112 = vmax.xlane.f32.xlu1 %v1111_v31  ;;  %v1114_v34 = vmax.f32 %v3274_v7, %v3280_v45  ;;  %v3296_v53 = vsel %vm1049_vm1, %v1043_v39, -1e+30  ;;  %v3300_v36 = vsel %vm1050_vm2, %v1044_v51, -1e+30  ;;  %vm3967_vm14 = vcmp.eq.s32.totalorder %v2867_v57, %v2858_v11 }
 0x22e   : > { %v1029_v18 = vsel %vm3967_vm14, %v1929_v2, %v965_v49  ;;  %v1138_v14 = vmax.f32 %v3296_v53, %v3300_v36  ;;  %v1030_v17 = vsel %vm934_vm15, %v1930_v4, %v966_v1  ;;  %vm3968_vm8 = vcmp.eq.s32.totalorder %v2867_v57, %v3169_v50 }
 0x22f   : > { %v3312_v58 = vsel %vm1049_vm1, %v1029_v18, -1e+30  ;;  %v1045_v25 = vsel %vm3968_vm8, %v1945_v40, %v3171_v54  ;;  %1115 = vmax.xlane.f32.xlu0 %v1114_v34  ;;  %v3320_v49 = vsel %vm1050_vm2, %v1030_v17, -1e+30  ;;  %vm3969_vm14 = vcmp.eq.s32.totalorder %v2869_v23, %v3169_v50 }
 0x230   : > { %v1046_v2 = vsel %vm3969_vm14, %v1946_v26, %v982_v56  ;;  %v3327_v1 = vsel %vm1049_vm1, %v1045_v25, -1e+30  ;;  %vm3970_vm3 = vcmp.eq.s32.totalorder %v2867_v57, %v2873_v27  ;;  %v1117_v54 = vmax.f32 %v3312_v58, %v3320_v49 }
 0x231   : > { %v1031_v4 = vsel %vm3970_vm3, %v1931_v30, %v967_v33  ;;  %v3336_v40 = vsel %vm1050_vm2, %v1046_v2, -1e+30  ;;  %v1032_v48 = vsel %vm936_vm10, %v1932_v8, %v968_v29  ;;  %1136 = vmax.xlane.f32.xlu1 %v1135_v59  ;;  %v1047_v30 = vsel %vm951_vm9, %v1947_v28, %v983_v32 }
 0x232   : > { %v3343_v56 = vsel %vm1049_vm1, %v1031_v4, -1e+30  ;;  %v1141_v26 = vmax.f32 %v3327_v1, %v3336_v40  ;;  %v3349_v33 = vsel %vm1050_vm2, %v1032_v48, -1e+30  ;;  %v1048_v29 = vsel %vm952_vm0, %v1948_v37, %v984_v38 }
 0x233   : > { %v1120_v8 = vmax.f32 %v3343_v56, %v3349_v33  ;;  %v3361_v19 = vsel %vm1049_vm1, %v1047_v30, -1e+30  ;;  %v3365_v31 = vsel %vm1050_vm2, %v1048_v29, -1e+30  ;;  %vm3971_vm3 = vcmp.eq.s32.totalorder %v2867_v57, %v2849_v42  ;;  %1139 = vmax.xlane.f32.xlu0 %v1138_v14 }
 0x234   : > { %v1534_v32 = vsel %vm3971_vm3, %v3036_v15, 0.0  ;;  %v1144_v38 = vmax.f32 %v3361_v19, %v3365_v31  ;;  %vm3972_vm8 = vcmp.eq.s32.totalorder %v2869_v23, %v2849_v42  ;;  %vm3973_vm1 = vcmp.eq.s32.totalorder %v2867_v57, %v2851_v6 }
 0x235   : > { %v1535_v28 = vsel %vm3972_vm8, %v3043_v22, 0.0  ;;  %v1538_v37 = vsel %vm3973_vm1, %v3160_v35, 0.0  ;;  %vm3974_vm2 = vcmp.eq.s32.totalorder %v2869_v23, %v2851_v6  ;;  %v1542_v42 = vsel %vm931_vm7, %v3274_v7, 0.0  ;;  %1118 = vmax.xlane.f32.xlu1 %v1117_v54  ;;  %v3981_v54 = vld [vmem:[#allocation13_spill] sm:$0xff] }
 0x236   : > { %v1539_v13 = vsel %vm3974_vm2, %v3164_v46, 0.0  ;;  %v3385_v59 = vadd.f32 %v1535_v28, %v1534_v32  ;;  %v1543_v51 = vsel %vm932_vm13, %v3280_v45, 0.0  ;;  %vm3975_vm14 = vcmp.eq.s32.totalorder %v2867_v57, %v2845_v63 }
 0x237   : > { %v3387_v39 = vadd.f32 %v1539_v13, %v1538_v37  ;;  %v3397_v34 = vadd.f32 %v1543_v51, %v1542_v42  ;;  %v1532_v6 = vsel %vm3975_vm14, %v2943_v0, 0.0  ;;  %vm3976_vm3 = vcmp.eq.s32.totalorder %v2869_v23, %v2845_v63  ;;  %1121 = vmax.xlane.f32.xlu0 %v1120_v8  ;;  %v3985_v51 = vld [vmem:[#allocation10_spill] sm:$0xff] }
 0x238   : > { %v1533_v18 = vsel %vm3976_vm3, %v2989_v47, 0.0  ;;  %vm3977_vm7 = vcmp.eq.s32.totalorder %v2867_v57, %v2873_v27  ;;  %v1547_v17 = vsel %vm936_vm10, %v3349_v33, 0.0  ;;  %vm3978_vm13 = vcmp.eq.s32.totalorder %v2867_v57, %v2847_v3 }
 0x239   : > { %v1546_v14 = vsel %vm3977_vm7, %v3343_v56, 0.0  ;;  %v3411_v10 = vadd.f32 %v1533_v18, %v1532_v6  ;;  %v1536_v25 = vsel %vm3978_vm13, %v3131_v62, 0.0  ;;  %vm3979_vm8 = vcmp.eq.s32.totalorder %v2869_v23, %v2847_v3  ;;  %1142 = vmax.xlane.f32.xlu1 %v1141_v26  ;;  %v3988_v18 = vld [vmem:[#allocation11_spill] sm:$0xff] }
 0x23a   : > { %v1537_v63 = vsel %vm3979_vm8, %v3139_v21, 0.0  ;;  %v3425_v2 = vadd.f32 %v1547_v17, %v1546_v14  ;;  %vm3980_vm1 = vcmp.eq.s32.totalorder %v2867_v57, %v2895_v43  ;;  %vm3982_vm10 = vcmp.eq.s32.totalorder %v2869_v23, %v2895_v43  ;;  %v3990_v17 = vld [vmem:[#allocation14_spill] sm:$0xff] }
 0x23b   : > { %v3427_v4 = vadd.f32 %v1537_v63, %v1536_v25  ;;  %v1550_v27 = vsel %vm3980_vm1, %v3012_v12, 0.0  ;;  %v1551_v48 = vsel %vm3982_vm10, %v3981_v54, 0.0  ;;  %v1540_v3 = vsel %vm929_vm12, %v3236_v52, 0.0  ;;  %1145 = vmax.xlane.f32.xlu0 %v1144_v38  ;;  %v3991_v25 = vld [vmem:[#allocation12_spill] sm:$0xff]  ;;  %v3993_v38 = vld [vmem:[#allocation15_spill] sm:$0xff] }
 0x23c   : > { %v3437_v30 = vadd.f32 %v1551_v48, %v1550_v27  ;;  %v1541_v29 = vsel %vm930_vm5, %v3245_v5, 0.0  ;;  %v1554_v8 = vsel %vm943_vm6, %v3216_v9, 0.0  ;;  %v1555_v32 = vsel %vm944_vm11, %v3220_v60, 0.0 }
 0x23d   : > { %v3451_v43 = vadd.f32 %v1541_v29, %v1540_v3  ;;  %vm3983_vm12 = vcmp.eq.s32.totalorder %v2867_v57, %v2858_v11  ;;  %v1545_v16 = vsel %vm934_vm15, %v3320_v49, 0.0  ;;  %v3465_v37 = vadd.f32 %v1555_v32, %v1554_v8  ;;  %v3986_v11 = vld [vmem:[#allocation9_spill] sm:$0xff] }
 0x23e   : > { %v1544_v28 = vsel %vm3983_vm12, %v3312_v58, 0.0  ;;  %v1558_v41 = vsel %vm947_vm4, %v3296_v53, 0.0  ;;  %vm3984_vm5 = vcmp.eq.s32.totalorder %v2869_v23, %v3099_v20  ;;  %vm3987_vm6 = vcmp.eq.s32.totalorder %v2867_v57, %v3986_v11 }
 0x23f   : > { %v3467_v26 = vadd.f32 %v1545_v16, %v1544_v28  ;;  %v1559_v13 = vsel %vm3984_vm5, %v3300_v36, 0.0  ;;  %v1548_v6 = vsel %vm3987_vm6, %v3985_v51, 0.0  ;;  %vm3989_vm11 = vcmp.eq.s32.totalorder %v2869_v23, %v3986_v11  ;;  %v3529_v11 = vld [vmem:[#allocation3 + $0x40] sm:$0xff] }
 0x240   : > { %v3477_v42 = vadd.f32 %v1559_v13, %v1558_v41  ;;  %v1549_v14 = vsel %vm3989_vm11, %v3988_v18, 0.0  ;;  %vm3992_vm4 = vcmp.eq.s32.totalorder %v2867_v57, %v3991_v25  ;;  %vm3994_vm15 = vcmp.eq.s32.totalorder %v2869_v23, %v3991_v25  ;;  %v3544_v25 = vld [vmem:[#allocation3 + $0x48] sm:$0xff] }
 0x241   : > { %v1552_v63 = vsel %vm3992_vm4, %v3990_v17, 0.0  ;;  %v3491_v20 = vadd.f32 %v1549_v14, %v1548_v6  ;;  %v1553_v27 = vsel %vm3994_vm15, %v3993_v38, 0.0  ;;  %vm3995_vm2 = vcmp.eq.s32.totalorder %v2867_v57, %v3069_v44  ;;  %v3584_v14 = vld [vmem:[#allocation3 + $0x18] sm:$0xff] }
 0x242   : > { %v1556_v48 = vsel %vm3995_vm2, %v3254_v55, 0.0  ;;  %vm3996_vm14 = vcmp.eq.s32.totalorder %v2869_v23, %v3069_v44  ;;  %v3505_v29 = vadd.f32 %v1553_v27, %v1552_v63  ;;  %vm3997_vm3 = vcmp.eq.s32.totalorder %v2867_v57, %v3169_v50  ;;  %v3539_v57 = vld [vmem:[#allocation3] sm:$0xff]  ;;  %v3546_v63 = vld [vmem:[#allocation3 + $0x8] sm:$0xff]  ;;  %4006 = vst [vmem:[#allocation16_spill] sm:$0xff] %v3584_v14 }
 0x243   : > { %v1557_v3 = vsel %vm3996_vm14, %v3265_v61, 0.0  ;;  %v1560_v32 = vsel %vm3997_vm3, %v3327_v1, 0.0  ;;  %vm3998_vm7 = vcmp.eq.s32.totalorder %v2869_v23, %v3169_v50  ;;  %v1562_v44 = vsel %vm951_vm9, %v3361_v19, 0.0  ;;  %3999 = vst [vmem:[#allocation13_spill] sm:$0xff] %v3546_v63 }
 0x244   : > { %v3507_v8 = vadd.f32 %v1557_v3, %v1556_v48  ;;  %v1561_v28 = vsel %vm3998_vm7, %v3336_v40, 0.0  ;;  %v1563_v41 = vsel %vm952_vm0, %v3365_v31, 0.0  ;;  %vm1483_vm13 = vcmask 7168  }
 0x245   : > { %v3517_v16 = vadd.f32 %v1561_v28, %v1560_v32  ;;  %v3527_v13 = vadd.f32 %v1563_v41, %v1562_v44 }
 0x29a   : > { %v1125_v6 = vpop.xlane.xlu1 %1124 }
 0x29b   : > { %v3532_v50 = vmax.f32 %v3529_v11, %v1125_v6  ;;  %v3569_v6 = vld [vmem:[#allocation3 + $0x50] sm:$0xff] }
 0x29c   : > { %4002 = vst [vmem:[#allocation11_spill] sm:$0xff] %v3569_v6 }
 0x29d   : > { %1508 = vst.msk [vmem:[#allocation3 + $0x40] sm:$0xff] %vm1483_vm13, %v3532_v50  ;;  %1285 = vperm.xlu0 %2096, %v3532_v50  }
 0x2a1   : > { %v1101_v23 = vpop.xlane.xlu0 %1100 }
 0x2a2   : > { %v3542_v24 = vmax.f32 %v3539_v57, %v1101_v23 }
 0x2a4   : > { %1500 = vst.msk [vmem:[#allocation3] sm:$0xff] %vm1483_vm13, %v3542_v24  ;;  %1245 = vperm.xlu1 %2097, %v3542_v24   ;;  %v1104_v3 = vpop.xlane.xlu1 %1103 }
 0x2a5   : > { %v1128_v48 = vpop.xlane.xlu0 %1127  ;;  %v3557_v28 = vmax.f32 %v3546_v63, %v1104_v3  ;;  %v3606_v63 = vld [vmem:[#allocation3 + $0x28] sm:$0xff] }
 0x2a6   : > { %v3554_v32 = vmax.f32 %v3544_v25, %v1128_v48  ;;  %v3571_v48 = vld [vmem:[#allocation3 + $0x10] sm:$0xff]  ;;  %4011 = vst [vmem:[#allocation21_spill] sm:$0xff] %v3606_v63 }
 0x2a7   : > { %4001 = vst [vmem:[#allocation9_spill] sm:$0xff] %v3557_v28  ;;  %1501 = vst.msk [vmem:[#allocation3 + $0x8] sm:$0xff] %vm1483_vm13, %v3557_v28  ;;  %1250 = vperm.xlu0 %2096, %v3557_v28  }
 0x2a8   : > { %4000 = vst [vmem:[#allocation10_spill] sm:$0xff] %v3554_v32  ;;  %1509 = vst.msk [vmem:[#allocation3 + $0x48] sm:$0xff] %vm1483_vm13, %v3554_v32  ;;  %1290 = vperm.xlu1 %2097, %v3554_v32   ;;  %v3626_v32 = vld [vmem:[#allocation3 + $0x68] sm:$0xff] }
 0x2a9   : > { %4003 = vst [vmem:[#allocation14_spill] sm:$0xff] %v3571_v48  ;;  %4015 = vst [vmem:[#allocation25_spill] sm:$0xff] %v3626_v32 }
 0x2ab   : > { %v1131_v23 = vpop.xlane.xlu1 %1130 }
 0x2ac   : > { %v3574_v3 = vmax.f32 %v3569_v6, %v1131_v23  ;;  %v3594_v6 = vld [vmem:[#allocation3 + $0x58] sm:$0xff] }
 0x2ad   : > { %4008 = vst [vmem:[#allocation18_spill] sm:$0xff] %v3594_v6 }
 0x2ae   : > { %4004 = vst [vmem:[#allocation12_spill] sm:$0xff] %v3574_v3  ;;  %v1107_v44 = vpop.xlane.xlu0 %1106  ;;  %1510 = vst.msk [vmem:[#allocation3 + $0x50] sm:$0xff] %vm1483_vm13, %v3574_v3  ;;  %1295 = vperm.xlu0 %2096, %v3574_v3  }
 0x2af   : > { %v3581_v41 = vmax.f32 %v3571_v48, %v1107_v44  ;;  %v3601_v48 = vld [vmem:[#allocation3 + $0x20] sm:$0xff] }
 0x2b0   : > { %4009 = vst [vmem:[#allocation19_spill] sm:$0xff] %v3601_v48 }
 0x2b1   : > { %4005 = vst [vmem:[#allocation15_spill] sm:$0xff] %v3581_v41  ;;  %1502 = vst.msk [vmem:[#allocation3 + $0x10] sm:$0xff] %vm1483_vm13, %v3581_v41  ;;  %1255 = vperm.xlu1 %2097, %v3581_v41  }
 0x2b2   : > { %v1110_v23 = vpop.xlane.xlu0 %1109 }
 0x2b3   : > { %v3592_v27 = vmax.f32 %v3584_v14, %v1110_v23 }
 0x2b5   : > { %4007 = vst [vmem:[#allocation17_spill] sm:$0xff] %v3592_v27  ;;  %1503 = vst.msk [vmem:[#allocation3 + $0x18] sm:$0xff] %vm1483_vm13, %v3592_v27  ;;  %1260 = vperm.xlu1 %2097, %v3592_v27   ;;  %v3616_v27 = vld [vmem:[#allocation3 + $0x60] sm:$0xff] }
 0x2b6   : > { %4013 = vst [vmem:[#allocation23_spill] sm:$0xff] %v3616_v27 }
 0x2b8   : > { %v1134_v28 = vpop.xlane.xlu0 %1133 }
 0x2b9   : > { %v3604_v3 = vmax.f32 %v3594_v6, %v1134_v28 }
 0x2ba   : > { %v1113_v41 = vpop.xlane.xlu1 %1112 }
 0x2bb   : > { %4010 = vst [vmem:[#allocation20_spill] sm:$0xff] %v3604_v3  ;;  %1511 = vst.msk [vmem:[#allocation3 + $0x58] sm:$0xff] %vm1483_vm13, %v3604_v3  ;;  %v3613_v44 = vmax.f32 %v3601_v48, %v1113_v41  ;;  %1300 = vperm.xlu1 %2097, %v3604_v3   ;;  %v3636_v48 = vld [vmem:[#allocation3 + $0x30] sm:$0xff] }
 0x2bc   : > { %v1116_v14 = vpop.xlane.xlu0 %1115 }
 0x2bd   : > { %4012 = vst [vmem:[#allocation22_spill] sm:$0xff] %v3613_v44  ;;  %1504 = vst.msk [vmem:[#allocation3 + $0x20] sm:$0xff] %vm1483_vm13, %v3613_v44  ;;  %1265 = vperm.xlu0 %2096, %v3613_v44   ;;  %v3624_v23 = vmax.f32 %v3606_v63, %v1116_v14  ;;  %v3646_v63 = vld [vmem:[#allocation3 + $0x38] sm:$0xff]  ;;  %v3656_v14 = vld [vmem:[#allocation3 + $0x70] sm:$0xff] }
 0x2be   : > { %v1137_v6 = vpop.xlane.xlu1 %1136 }
 0x2bf   : > { %4014 = vst [vmem:[#allocation24_spill] sm:$0xff] %v3624_v23  ;;  %v3629_v41 = vmax.f32 %v3616_v27, %v1137_v6  ;;  %1505 = vst.msk [vmem:[#allocation3 + $0x28] sm:$0xff] %vm1483_vm13, %v3624_v23  ;;  %1270 = vperm.xlu1 %2097, %v3624_v23   ;;  %v3666_v27 = vld [vmem:[#allocation3 + $0x78] sm:$0xff] }
 0x2c0   : > { %v1140_v28 = vpop.xlane.xlu0 %1139 }
 0x2c1   : > { %4016 = vst [vmem:[#allocation26_spill] sm:$0xff] %v3629_v41  ;;  %1512 = vst.msk [vmem:[#allocation3 + $0x60] sm:$0xff] %vm1483_vm13, %v3629_v41  ;;  %1305 = vperm.xlu0 %2096, %v3629_v41   ;;  %v3644_v6 = vmax.f32 %v3626_v32, %v1140_v28 }
 0x2c2   : > { %v1119_v3 = vpop.xlane.xlu1 %1118 }
 0x2c3   : > { %4017 = vst [vmem:[#allocation27_spill] sm:$0xff] %v3644_v6  ;;  %1513 = vst.msk [vmem:[#allocation3 + $0x68] sm:$0xff] %vm1483_vm13, %v3644_v6  ;;  %v3653_v44 = vmax.f32 %v3636_v48, %v1119_v3  ;;  %1310 = vperm.xlu1 %2097, %v3644_v6  }
 0x2c4   : > { %v1122_v41 = vpop.xlane.xlu0 %1121 }
 0x2c5   : > { %4018 = vst [vmem:[#allocation28_spill] sm:$0xff] %v3653_v44  ;;  %1506 = vst.msk [vmem:[#allocation3 + $0x30] sm:$0xff] %vm1483_vm13, %v3653_v44  ;;  %1275 = vperm.xlu0 %2096, %v3653_v44   ;;  %v3664_v23 = vmax.f32 %v3646_v63, %v1122_v41 }
 0x2c6   : > { %v1143_v32 = vpop.xlane.xlu1 %1142 }
 0x2c7   : > { %v3669_v3 = vmax.f32 %v3656_v14, %v1143_v32  ;;  %v1170_v6 = vsub.f32 %v3646_v63, %v3664_v23  ;;  %1507 = vst.msk [vmem:[#allocation3 + $0x38] sm:$0xff] %vm1483_vm13, %v3664_v23  ;;  %1280 = vperm.xlu1 %2097, %v3664_v23  }
 0x2c8   : > { %v1146_v28 = vpop.xlane.xlu0 %1145 }
 0x2c9   : > { %v1177_v44 = vsub.f32 %v3656_v14, %v3669_v3  ;;  %1514 = vst.msk [vmem:[#allocation3 + $0x70] sm:$0xff] %vm1483_vm13, %v3669_v3  ;;  %1315 = vperm.xlu0 %2096, %v3669_v3   ;;  %v3682_v32 = vmax.f32 %v3666_v27, %v1146_v28  ;;  %v1216_v3 = vld [vmem:[#allocation4 + $0x28] sm:$0xff] }
 0x2cb   : > { %v1178_v41 = vsub.f32 %v3666_v27, %v3682_v32  ;;  %1515 = vst.msk [vmem:[#allocation3 + $0x78] sm:$0xff] %vm1483_vm13, %v3682_v32  ;;  %1320 = vperm.xlu1 %2097, %v3682_v32  }
 0x2cd   : > { %v1209_v63 = vmul.f32 1.442695, %v1178_v41  ;;  %v1224_v41 = vld [vmem:[#allocation4 + $0x68] sm:$0xff] }
 0x2e8   : > { %1568 = vadd.xlane.f32.xlu0 %v3385_v59 }
 0x2ec   : > { %1574 = vadd.xlane.f32.xlu0 %v3387_v39 }
 0x2ef   : > { %1565 = vadd.xlane.f32.xlu1 %v3411_v10 }
 0x2f0   : > { %1580 = vadd.xlane.f32.xlu0 %v3397_v34 }
 0x2f3   : > { %1571 = vadd.xlane.f32.xlu1 %v3427_v4 }
 0x2f4   : > { %1586 = vadd.xlane.f32.xlu0 %v3425_v2 }
 0x2f7   : > { %1577 = vadd.xlane.f32.xlu1 %v3451_v43 }
 0x2f8   : > { %1592 = vadd.xlane.f32.xlu0 %v3437_v30 }
 0x2fb   : > { %1583 = vadd.xlane.f32.xlu1 %v3467_v26 }
 0x2fc   : > { %1598 = vadd.xlane.f32.xlu0 %v3465_v37 }
 0x2ff   : > { %1589 = vadd.xlane.f32.xlu1 %v3491_v20 }
 0x300   : > { %1604 = vadd.xlane.f32.xlu0 %v3477_v42 }
 0x303   : > { %1595 = vadd.xlane.f32.xlu1 %v3505_v29 }
 0x307   : > { %1601 = vadd.xlane.f32.xlu1 %v3507_v8 }
 0x31c   : > { %v1286_v59 = vpop.permute.xlu0 %1285 }
 0x31d   : > { %v1339_v39 = vsub.f32 %v3985_v51, %v1286_v59  ;;  %v1340_v34 = vsub.f32 %v3988_v18, %v1286_v59 }
 0x31f   : > { %v1387_v10 = vmul.f32 1.442695, %v1339_v39  ;;  %v1389_v2 = vmul.f32 1.442695, %v1340_v34 }
 0x321   : > { %2122 = vpow2.f32 %v1387_v10 }
 0x322   : > { %2124 = vpow2.f32 %v1389_v2 }
 0x323   : > { %v1246_v4 = vpop.permute.xlu1 %1245 }
 0x324   : > { %v1323_v30 = vsub.f32 %v2943_v0, %v1246_v4  ;;  %v1324_v43 = vsub.f32 %v2989_v47, %v1246_v4 }
 0x326   : > { %v1355_v37 = vmul.f32 1.442695, %v1323_v30  ;;  %v1357_v26 = vmul.f32 1.442695, %v1324_v43  ;;  %v1251_v20 = vpop.permute.xlu0 %1250 }
 0x327   : > { %v1291_v42 = vpop.permute.xlu1 %1290  ;;  %v1325_v18 = vsub.f32 %v3036_v15, %v1251_v20  ;;  %v1326_v8 = vsub.f32 %v3043_v22, %v1251_v20 }
 0x328   : > { %2126 = vpow2.f32 %v1355_v37  ;;  %v1341_v29 = vsub.f32 %v3012_v12, %v1291_v42  ;;  %v1342_v51 = vsub.f32 %v3981_v54, %v1291_v42 }
 0x329   : > { %2128 = vpow2.f32 %v1357_v26  ;;  %v1359_v39 = vmul.f32 1.442695, %v1325_v18  ;;  %v1361_v0 = vmul.f32 1.442695, %v1326_v8 }
 0x32a   : > { %v1391_v28 = vmul.f32 1.442695, %v1341_v29  ;;  %v1393_v59 = vmul.f32 1.442695, %v1342_v51 }
 0x32b   : > { %v2123_v34 = vpop.eup %2122 }
 0x32c   : > { %2130 = vpow2.f32 %v1391_v28  ;;  %v2125_v47 = vpop.eup %2124 }
 0x32d   : > { %2132 = vpow2.f32 %v1393_v59  ;;  %v1296_v10 = vpop.permute.xlu0 %1295  ;;  %v1443_v54 = vadd.f32 %v2125_v47, %v2123_v34 }
 0x32e   : > { %2134 = vpow2.f32 %v1359_v39  ;;  %v1343_v2 = vsub.f32 %v3990_v17, %v1296_v10  ;;  %v1344_v12 = vsub.f32 %v3993_v38, %v1296_v10 }
 0x32f   : > { %2136 = vpow2.f32 %v1361_v0  ;;  %1444 = vadd.xlane.f32.xlu1 %v1443_v54 }
 0x330   : > { %v1256_v15 = vpop.permute.xlu1 %1255  ;;  %v1395_v30 = vmul.f32 1.442695, %v1343_v2  ;;  %v1397_v43 = vmul.f32 1.442695, %v1344_v12 }
 0x331   : > { %v1327_v4 = vsub.f32 %v3131_v62, %v1256_v15  ;;  %v1328_v22 = vsub.f32 %v3139_v21, %v1256_v15 }
 0x332   : > { %v2127_v37 = vpop.eup %2126  ;;  %2138 = vpow2.f32 %v1395_v30 }
 0x333   : > { %v1363_v26 = vmul.f32 1.442695, %v1327_v4  ;;  %v1365_v42 = vmul.f32 1.442695, %v1328_v22  ;;  %v2129_v20 = vpop.eup %2128  ;;  %2140 = vpow2.f32 %v1397_v43 }
 0x334   : > { %v1261_v29 = vpop.permute.xlu1 %1260  ;;  %v1419_v51 = vadd.f32 %v2129_v20, %v2127_v37 }
 0x335   : > { %2142 = vpow2.f32 %v1363_v26  ;;  %v1329_v17 = vsub.f32 %v3160_v35, %v1261_v29  ;;  %v1330_v38 = vsub.f32 %v3164_v46, %v1261_v29 }
 0x336   : > { %2144 = vpow2.f32 %v1365_v42  ;;  %v2131_v62 = vpop.eup %2130  ;;  %1420 = vadd.xlane.f32.xlu0 %v1419_v51 }
 0x337   : > { %v1367_v18 = vmul.f32 1.442695, %v1329_v17  ;;  %v1369_v21 = vmul.f32 1.442695, %v1330_v38  ;;  %v2133_v8 = vpop.eup %2132 }
 0x338   : > { %v2135_v59 = vpop.eup %2134  ;;  %v1446_v34 = vadd.f32 %v2133_v8, %v2131_v62 }
 0x339   : > { %2146 = vpow2.f32 %v1367_v18  ;;  %v2137_v47 = vpop.eup %2136 }
 0x33a   : > { %v1301_v28 = vpop.permute.xlu1 %1300  ;;  %2148 = vpow2.f32 %v1369_v21  ;;  %1447 = vadd.xlane.f32.xlu0 %v1446_v34  ;;  %v1422_v15 = vadd.f32 %v2137_v47, %v2135_v59 }
 0x33b   : > { %v1345_v39 = vsub.f32 %v3216_v9, %v1301_v28  ;;  %v1346_v0 = vsub.f32 %v3220_v60, %v1301_v28 }
 0x33c   : > { %v1266_v35 = vpop.permute.xlu0 %1265  ;;  %v2139_v4 = vpop.eup %2138  ;;  %1423 = vadd.xlane.f32.xlu1 %v1422_v15 }
 0x33d   : > { %v1399_v10 = vmul.f32 1.442695, %v1345_v39  ;;  %v1401_v46 = vmul.f32 1.442695, %v1346_v0  ;;  %v1331_v2 = vsub.f32 %v3236_v52, %v1266_v35  ;;  %v1332_v12 = vsub.f32 %v3245_v5, %v1266_v35  ;;  %v2141_v60 = vpop.eup %2140 }
 0x33e   : > { %v1271_v54 = vpop.permute.xlu1 %1270  ;;  %v1449_v38 = vadd.f32 %v2141_v60, %v2139_v4 }
 0x33f   : > { %2150 = vpow2.f32 %v1399_v10  ;;  %v1371_v22 = vmul.f32 1.442695, %v1331_v2  ;;  %v1373_v30 = vmul.f32 1.442695, %v1332_v12  ;;  %v1333_v9 = vsub.f32 %v3274_v7, %v1271_v54  ;;  %v2143_v26 = vpop.eup %2142 }
 0x340   : > { %2152 = vpow2.f32 %v1401_v46  ;;  %v1334_v43 = vsub.f32 %v3280_v45, %v1271_v54  ;;  %v1306_v37 = vpop.permute.xlu0 %1305  ;;  %v2145_v20 = vpop.eup %2144  ;;  %1450 = vadd.xlane.f32.xlu1 %v1449_v38 }
 0x341   : > { %2154 = vpow2.f32 %v1371_v22  ;;  %v1375_v52 = vmul.f32 1.442695, %v1333_v9  ;;  %v1347_v5 = vsub.f32 %v3254_v55, %v1306_v37  ;;  %v1348_v42 = vsub.f32 %v3265_v61, %v1306_v37 }
 0x342   : > { %2156 = vpow2.f32 %v1373_v30  ;;  %v1377_v29 = vmul.f32 1.442695, %v1334_v43  ;;  %v1311_v17 = vpop.permute.xlu1 %1310  ;;  %v1425_v21 = vadd.f32 %v2145_v20, %v2143_v26 }
 0x343   : > { %2158 = vpow2.f32 %v1375_v52  ;;  %v1403_v7 = vmul.f32 1.442695, %v1347_v5  ;;  %v1405_v51 = vmul.f32 1.442695, %v1348_v42  ;;  %v1349_v62 = vsub.f32 %v3296_v53, %v1311_v17  ;;  %v2147_v8 = vpop.eup %2146 }
 0x344   : > { %2160 = vpow2.f32 %v1377_v29  ;;  %v1350_v45 = vsub.f32 %v3300_v36, %v1311_v17  ;;  %v1276_v18 = vpop.permute.xlu0 %1275  ;;  %v2149_v59 = vpop.eup %2148  ;;  %1426 = vadd.xlane.f32.xlu0 %v1425_v21 }
 0x345   : > { %2162 = vpow2.f32 %v1403_v7  ;;  %v1407_v55 = vmul.f32 1.442695, %v1349_v62  ;;  %v1335_v61 = vsub.f32 %v3312_v58, %v1276_v18  ;;  %v1336_v28 = vsub.f32 %v3320_v49, %v1276_v18 }
 0x346   : > { %2164 = vpow2.f32 %v1405_v51  ;;  %v1409_v39 = vmul.f32 1.442695, %v1350_v45  ;;  %v1281_v0 = vpop.permute.xlu1 %1280  ;;  %v1428_v10 = vadd.f32 %v2149_v59, %v2147_v8  ;;  %v1517_v59 = vld [vmem:[#allocation5 + $0x8] sm:$0xff] }
 0x347   : > { %2166 = vpow2.f32 %v1407_v55  ;;  %v1379_v53 = vmul.f32 1.442695, %v1335_v61  ;;  %v1381_v34 = vmul.f32 1.442695, %v1336_v28  ;;  %v1337_v36 = vsub.f32 %v3343_v56, %v1281_v0 }
 0x348   : > { %2168 = vpow2.f32 %v1409_v39  ;;  %v1338_v47 = vsub.f32 %v3349_v33, %v1281_v0  ;;  %v1316_v35 = vpop.permute.xlu0 %1315  ;;  %1429 = vadd.xlane.f32.xlu0 %v1428_v10 }
 0x349   : > { %v2151_v46 = vpop.eup %2150  ;;  %2170 = vpow2.f32 %v1379_v53  ;;  %v1383_v58 = vmul.f32 1.442695, %v1337_v36  ;;  %v1351_v49 = vsub.f32 %v3327_v1, %v1316_v35  ;;  %v1352_v2 = vsub.f32 %v3336_v40, %v1316_v35  ;;  %v1519_v53 = vld [vmem:[#allocation5 + $0x18] sm:$0xff]  ;;  %v1521_v35 = vld [vmem:[#allocation5 + $0x28] sm:$0xff] }
 0x34a   : > { %v2153_v12 = vpop.eup %2152  ;;  %2172 = vpow2.f32 %v1381_v34  ;;  %v1385_v54 = vmul.f32 1.442695, %v1338_v47  ;;  %v1321_v15 = vpop.permute.xlu1 %1320  ;;  %v1516_v47 = vld [vmem:[#allocation5] sm:$0xff] }
 0x34b   : > { %v2155_v4 = vpop.eup %2154  ;;  %2174 = vpow2.f32 %v1383_v58  ;;  %v1411_v56 = vmul.f32 1.442695, %v1351_v49  ;;  %v1413_v22 = vmul.f32 1.442695, %v1352_v2  ;;  %v1353_v33 = vsub.f32 %v3361_v19, %v1321_v15  ;;  %v1518_v2 = vld [vmem:[#allocation5 + $0x10] sm:$0xff] }
 0x34c   : > { %v2157_v30 = vpop.eup %2156  ;;  %2176 = vpow2.f32 %v1385_v54  ;;  %v1354_v9 = vsub.f32 %v3365_v31, %v1321_v15  ;;  %v1452_v60 = vadd.f32 %v2153_v12, %v2151_v46 }
 0x34d   : > { %v2159_v43 = vpop.eup %2158  ;;  %2178 = vpow2.f32 %v1411_v56  ;;  %v1415_v1 = vmul.f32 1.442695, %v1353_v33  ;;  %v1431_v40 = vadd.f32 %v2157_v30, %v2155_v4  ;;  %v1520_v4 = vld [vmem:[#allocation5 + $0x20] sm:$0xff]  ;;  %v1525_v56 = vld [vmem:[#allocation5 + $0x48] sm:$0xff] }
 0x34e   : > { %v2161_v37 = vpop.eup %2160  ;;  %2180 = vpow2.f32 %v1413_v22  ;;  %v1417_v26 = vmul.f32 1.442695, %v1354_v9  ;;  %1453 = vadd.xlane.f32.xlu0 %v1452_v60  ;;  %v1522_v60 = vld [vmem:[#allocation5 + $0x30] sm:$0xff] }
 0x34f   : > { %v2163_v52 = vpop.eup %2162  ;;  %2182 = vpow2.f32 %v1415_v1  ;;  %1432 = vadd.xlane.f32.xlu1 %v1431_v40  ;;  %v1434_v5 = vadd.f32 %v2161_v37, %v2159_v43  ;;  %v1527_v43 = vld [vmem:[#allocation5 + $0x58] sm:$0xff] }
 0x350   : > { %v2165_v42 = vpop.eup %2164  ;;  %2184 = vpow2.f32 %v1417_v26 }
 0x351   : > { %v2167_v19 = vpop.eup %2166  ;;  %v1455_v20 = vadd.f32 %v2165_v42, %v2163_v52  ;;  %v1524_v52 = vld [vmem:[#allocation5 + $0x40] sm:$0xff] }
 0x352   : > { %v2169_v29 = vpop.eup %2168  ;;  %1435 = vadd.xlane.f32.xlu0 %v1434_v5  ;;  %v1529_v5 = vld [vmem:[#allocation5 + $0x68] sm:$0xff] }
 0x353   : > { %v2171_v31 = vpop.eup %2170  ;;  %1456 = vadd.xlane.f32.xlu1 %v1455_v20  ;;  %v1458_v17 = vadd.f32 %v2169_v29, %v2167_v19 }
 0x354   : > { %v2173_v38 = vpop.eup %2172 }
 0x355   : > { %v2175_v7 = vpop.eup %2174  ;;  %v1437_v51 = vadd.f32 %v2173_v38, %v2171_v31  ;;  %v1526_v31 = vld [vmem:[#allocation5 + $0x50] sm:$0xff] }
 0x356   : > { %v2177_v62 = vpop.eup %2176  ;;  %1459 = vadd.xlane.f32.xlu0 %v1458_v17 }
 0x357   : > { %v2179_v45 = vpop.eup %2178  ;;  %1438 = vadd.xlane.f32.xlu1 %v1437_v51  ;;  %v1440_v18 = vadd.f32 %v2177_v62, %v2175_v7  ;;  %v1528_v7 = vld [vmem:[#allocation5 + $0x60] sm:$0xff] }
 0x358   : > { %v2181_v21 = vpop.eup %2180 }
 0x359   : > { %v2183_v8 = vpop.eup %2182  ;;  %v1461_v55 = vadd.f32 %v2181_v21, %v2179_v45  ;;  %v4019_v45 = vsub.f32 %v3529_v11, %v3532_v50  ;;  %v4020_v21 = vsub.f32 %v3539_v57, %v3542_v24  ;;  %v4026_v11 = vld [vmem:[#allocation11_spill] sm:$0xff]  ;;  %v4027_v50 = vld [vmem:[#allocation12_spill] sm:$0xff]  ;;  %v4029_v24 = vld [vmem:[#allocation14_spill] sm:$0xff] }
 0x35a   : > { %v2185_v61 = vpop.eup %2184  ;;  %1441 = vadd.xlane.f32.xlu0 %v1440_v18 }
 0x35b   : > { %1462 = vadd.xlane.f32.xlu1 %v1461_v55  ;;  %v1464_v28 = vadd.f32 %v2185_v61, %v2183_v8  ;;  %v1195_v18 = vmul.f32 1.442695, %v4019_v45  ;;  %v1179_v8 = vmul.f32 1.442695, %v4020_v21  ;;  %v4021_v55 = vld [vmem:[#allocation10_spill] sm:$0xff]  ;;  %v4044_v21 = vld [vmem:[#allocation23_spill] sm:$0xff] }
 0x35c   : > { %v4022_v61 = vsub.f32 %v3544_v25, %v4021_v55 }
 0x35d   : > { %2186 = vpow2.f32 %v1195_v18  ;;  %v1221_v18 = vld [vmem:[#allocation4 + $0x50] sm:$0xff] }
 0x35e   : > { %1465 = vadd.xlane.f32.xlu0 %v1464_v28  ;;  %2188 = vpow2.f32 %v1179_v8  ;;  %v1197_v28 = vmul.f32 1.442695, %v4022_v61  ;;  %v4045_v8 = vld [vmem:[#allocation26_spill] sm:$0xff] }
 0x35f   : > { %1607 = vadd.xlane.f32.xlu1 %v3517_v16  ;;  %v1523_v16 = vld [vmem:[#allocation5 + $0x38] sm:$0xff]  ;;  %v4046_v55 = vsub.f32 %v4044_v21, %v4045_v8 }
 0x360   : > { %2190 = vpow2.f32 %v1197_v28 }
 0x361   : > { %v1203_v61 = vmul.f32 1.442695, %v4046_v55  ;;  %v1226_v55 = vld [vmem:[#allocation4 + $0x78] sm:$0xff] }
 0x362   : > { %1610 = vadd.xlane.f32.xlu0 %v3527_v13 }
 0x375   : > { %v1569_v39 = vpop.xlane.xlu0 %1568 }
 0x376   : > { %v1613_v0 = vadd.f32 %v1569_v39, %v1517_v59  ;;  %v4023_v59 = vld [vmem:[#allocation13_spill] sm:$0xff] }
 0x377   : > { %v4024_v39 = vld [vmem:[#allocation9_spill] sm:$0xff] }
 0x378   : > { %1629 = vst.msk [vmem:[#allocation5 + $0x8] sm:$0xff] %vm1483_vm13, %v1613_v0  ;;  %v4025_v0 = vsub.f32 %v4023_v59, %v4024_v39  ;;  %v1213_v39 = vld [vmem:[#allocation4 + $0x10] sm:$0xff] }
 0x379   : > { %v1575_v34 = vpop.xlane.xlu0 %1574 }
 0x37a   : > { %v1615_v36 = vadd.f32 %v1575_v34, %v1519_v53  ;;  %v1181_v53 = vmul.f32 1.442695, %v4025_v0  ;;  %v2187_v34 = vpop.eup %2186 }
 0x37c   : > { %1631 = vst.msk [vmem:[#allocation5 + $0x18] sm:$0xff] %vm1483_vm13, %v1615_v36  ;;  %v1566_v10 = vpop.xlane.xlu1 %1565  ;;  %v1219_v36 = vld [vmem:[#allocation4 + $0x40] sm:$0xff]  ;;  %2192 = vpow2.f32 %v1181_v53 }
 0x37d   : > { %v1581_v46 = vpop.xlane.xlu0 %1580  ;;  %v1612_v58 = vadd.f32 %v1566_v10, %v1516_v47  ;;  %v4028_v47 = vsub.f32 %v4026_v11, %v4027_v50  ;;  %v1235_v10 = vmul.f32 %v2187_v34, %v1219_v36  ;;  %v4047_v53 = vld [vmem:[#allocation25_spill] sm:$0xff]  ;;  %v4048_v34 = vld [vmem:[#allocation27_spill] sm:$0xff] }
 0x37e   : > { %v1617_v49 = vadd.f32 %v1581_v46, %v1521_v35  ;;  %v4030_v46 = vld [vmem:[#allocation15_spill] sm:$0xff]  ;;  %v4049_v36 = vsub.f32 %v4047_v53, %v4048_v34 }
 0x37f   : > { %1628 = vst.msk [vmem:[#allocation5] sm:$0xff] %vm1483_vm13, %v1612_v58  ;;  %v1199_v35 = vmul.f32 1.442695, %v4028_v47  ;;  %v4031_v58 = vsub.f32 %v4029_v24, %v4030_v46  ;;  %v4050_v47 = vld [vmem:[#allocation28_spill] sm:$0xff] }
 0x380   : > { %1633 = vst.msk [vmem:[#allocation5 + $0x28] sm:$0xff] %vm1483_vm13, %v1617_v49  ;;  %v1572_v13 = vpop.xlane.xlu1 %1571  ;;  %v1205_v11 = vmul.f32 1.442695, %v4049_v36 }
 0x381   : > { %v1587_v12 = vpop.xlane.xlu0 %1586  ;;  %v1614_v54 = vadd.f32 %v1572_v13, %v1518_v2  ;;  %v1183_v49 = vmul.f32 1.442695, %v4031_v58  ;;  %v2189_v2 = vpop.eup %2188  ;;  %2194 = vpow2.f32 %v1199_v35  ;;  %v4032_v13 = vld [vmem:[#allocation16_spill] sm:$0xff]  ;;  %v4051_v35 = vsub.f32 %v3636_v48, %v4050_v47 }
 0x382   : > { %v1619_v15 = vadd.f32 %v1587_v12, %v1523_v16  ;;  %v1211_v16 = vld [vmem:[#allocation4] sm:$0xff] }
 0x383   : > { %1630 = vst.msk [vmem:[#allocation5 + $0x10] sm:$0xff] %vm1483_vm13, %v1614_v54  ;;  %2196 = vpow2.f32 %v1183_v49  ;;  %v4033_v12 = vld [vmem:[#allocation17_spill] sm:$0xff]  ;;  %v1214_v49 = vld [vmem:[#allocation4 + $0x18] sm:$0xff] }
 0x384   : > { %1635 = vst.msk [vmem:[#allocation5 + $0x38] sm:$0xff] %vm1483_vm13, %v1619_v15  ;;  %v1578_v22 = vpop.xlane.xlu1 %1577  ;;  %v4034_v54 = vsub.f32 %v4032_v13, %v4033_v12 }
 0x385   : > { %v1593_v33 = vpop.xlane.xlu0 %1592  ;;  %v1616_v30 = vadd.f32 %v1578_v22, %v1520_v4  ;;  %v1227_v4 = vmul.f32 %v2189_v2, %v1211_v16  ;;  %v1193_v2 = vmul.f32 1.442695, %v1170_v6  ;;  %v1207_v16 = vmul.f32 1.442695, %v1177_v44 }
 0x386   : > { %v1621_v9 = vadd.f32 %v1593_v33, %v1525_v56  ;;  %v1185_v15 = vmul.f32 1.442695, %v4034_v54  ;;  %v2191_v56 = vpop.eup %2190  ;;  %v1220_v33 = vld [vmem:[#allocation4 + $0x48] sm:$0xff]  ;;  %v1222_v54 = vld [vmem:[#allocation4 + $0x58] sm:$0xff] }
 0x387   : > { %1632 = vst.msk [vmem:[#allocation5 + $0x20] sm:$0xff] %vm1483_vm13, %v1616_v30 }
 0x388   : > { %1637 = vst.msk [vmem:[#allocation5 + $0x48] sm:$0xff] %vm1483_vm13, %v1621_v9  ;;  %v1584_v1 = vpop.xlane.xlu1 %1583  ;;  %v2193_v9 = vpop.eup %2192  ;;  %2198 = vpow2.f32 %v1185_v15 }
 0x389   : > { %v1599_v40 = vpop.xlane.xlu0 %1598  ;;  %v1618_v37 = vadd.f32 %v1584_v1, %v1522_v60  ;;  %v4035_v60 = vld [vmem:[#allocation18_spill] sm:$0xff] }
 0x38a   : > { %v1623_v26 = vadd.f32 %v1599_v40, %v1527_v43  ;;  %v4036_v43 = vld [vmem:[#allocation20_spill] sm:$0xff] }
 0x38b   : > { %1634 = vst.msk [vmem:[#allocation5 + $0x30] sm:$0xff] %vm1483_vm13, %v1618_v37  ;;  %v4037_v1 = vsub.f32 %v4035_v60, %v4036_v43  ;;  %v1212_v37 = vld [vmem:[#allocation4 + $0x8] sm:$0xff] }
 0x38c   : > { %1639 = vst.msk [vmem:[#allocation5 + $0x58] sm:$0xff] %vm1483_vm13, %v1623_v26  ;;  %v1590_v42 = vpop.xlane.xlu1 %1589  ;;  %v1236_v26 = vmul.f32 %v2191_v56, %v1220_v33  ;;  %v1215_v56 = vld [vmem:[#allocation4 + $0x20] sm:$0xff] }
 0x38d   : > { %v1605_v19 = vpop.xlane.xlu0 %1604  ;;  %v1620_v20 = vadd.f32 %v1590_v42, %v1524_v52  ;;  %v1201_v40 = vmul.f32 1.442695, %v4037_v1  ;;  %v4038_v52 = vld [vmem:[#allocation19_spill] sm:$0xff] }
 0x38e   : > { %v1625_v29 = vadd.f32 %v1605_v19, %v1529_v5  ;;  %v4039_v5 = vld [vmem:[#allocation22_spill] sm:$0xff] }
 0x38f   : > { %1636 = vst.msk [vmem:[#allocation5 + $0x40] sm:$0xff] %vm1483_vm13, %v1620_v20  ;;  %v4040_v42 = vsub.f32 %v4038_v52, %v4039_v5  ;;  %2200 = vpow2.f32 %v1201_v40  ;;  %v1217_v52 = vld [vmem:[#allocation4 + $0x30] sm:$0xff] }
 0x390   : > { %1641 = vst.msk [vmem:[#allocation5 + $0x68] sm:$0xff] %vm1483_vm13, %v1625_v29  ;;  %v1596_v17 = vpop.xlane.xlu1 %1595 }
 0x391   : > { %v1622_v38 = vadd.f32 %v1596_v17, %v1526_v31  ;;  %v1187_v19 = vmul.f32 1.442695, %v4040_v42  ;;  %v1228_v31 = vmul.f32 %v2193_v9, %v1212_v37  ;;  %v2195_v17 = vpop.eup %2194  ;;  %v1223_v9 = vld [vmem:[#allocation4 + $0x60] sm:$0xff] }
 0x392   : > { %v2197_v59 = vpop.eup %2196  ;;  %v1237_v0 = vmul.f32 %v2195_v17, %v1221_v18 }
 0x393   : > { %1638 = vst.msk [vmem:[#allocation5 + $0x50] sm:$0xff] %vm1483_vm13, %v1622_v38  ;;  %v4041_v38 = vld [vmem:[#allocation21_spill] sm:$0xff]  ;;  %2202 = vpow2.f32 %v1187_v19  ;;  %v1229_v24 = vmul.f32 %v2197_v59, %v1213_v39  ;;  %v2199_v46 = vpop.eup %2198  ;;  %v1530_v39 = vld [vmem:[#allocation5 + $0x70] sm:$0xff] }
 0x394   : > { %v1602_v51 = vpop.xlane.xlu1 %1601  ;;  %v1230_v48 = vmul.f32 %v2199_v46, %v1214_v49 }
 0x395   : > { %v1624_v62 = vadd.f32 %v1602_v51, %v1528_v7  ;;  %v4042_v7 = vld [vmem:[#allocation24_spill] sm:$0xff] }
 0x396   : > { %v4043_v51 = vsub.f32 %v4041_v38, %v4042_v7 }
 0x397   : > { %1640 = vst.msk [vmem:[#allocation5 + $0x60] sm:$0xff] %vm1483_vm13, %v1624_v62 }
 0x398   : > { %v1189_v62 = vmul.f32 1.442695, %v4043_v51  ;;  %v1225_v51 = vld [vmem:[#allocation4 + $0x70] sm:$0xff] }
 0x399   : > { %v2201_v13 = vpop.eup %2200 }
 0x39a   : > { %2204 = vpow2.f32 %v1189_v62  ;;  %v1238_v23 = vmul.f32 %v2201_v13, %v1222_v54  ;;  %v1648_v54 = vld [vmem:[#allocation3] sm:$0xff] (!%p1949_p7) }
 0x39b   : > { %2206 = vpow2.f32 %v1203_v61 }
 0x39c   : > { %2208 = vpow2.f32 %v1205_v11 }
 0x39d   : > { %v2203_v15 = vpop.eup %2202 }
 0x39e   : > { %v1231_v44 = vmul.f32 %v2203_v15, %v1215_v56 }
 0x3a4   : > { %v2205_v14 = vpop.eup %2204 }
 0x3a5   : > { %v1232_v43 = vmul.f32 %v2205_v14, %v1216_v3  ;;  %v1650_v3 = vld [vmem:[#allocation3 + $0x10] sm:$0xff] (!%p1949_p7) }
 0x3bc   : > { %v1445_v57 = vpop.xlane.xlu1 %1444 }
 0x3bd   : > { %v1475_v25 = vadd.f32 %v1445_v57, %v1235_v10  ;;  %v1191_v10 = vmul.f32 1.442695, %v4051_v35 }
 0x3bf   : > { %1492 = vst.msk [vmem:[#allocation4 + $0x40] sm:$0xff] %vm1483_vm13, %v1475_v25  ;;  %2210 = vpow2.f32 %v1191_v10 }
 0x3c0   : > { %2212 = vpow2.f32 %v1193_v2 }
 0x3c1   : > { %2214 = vpow2.f32 %v1207_v16 }
 0x3c2   : > { %2216 = vpow2.f32 %v1209_v63  ;;  %v1649_v63 = vld [vmem:[#allocation3 + $0x8] sm:$0xff] (!%p1949_p7) }
 0x3c3   : > { %v1421_v22 = vpop.xlane.xlu0 %1420 }
 0x3c4   : > { %v1467_v30 = vadd.f32 %v1421_v22, %v1227_v4  ;;  %v2207_v22 = vpop.eup %2206 }
 0x3c5   : > { %v2209_v1 = vpop.eup %2208  ;;  %v1239_v27 = vmul.f32 %v2207_v22, %v1223_v9  ;;  %v1729_v9 = vld [vmem:[#allocation5 + $0x8] sm:$0xff] (!%p1949_p7) }
 0x3c6   : > { %1484 = vst.msk [vmem:[#allocation4] sm:$0xff] %vm1483_vm13, %v1467_v30  ;;  %v1240_v42 = vmul.f32 %v2209_v1, %v1224_v41  ;;  %v1672_v16 = vld [vmem:[#allocation4 + $0x40] sm:$0xff] (!%p1949_p7)  ;;  %v1730_v41 = vld [vmem:[#allocation5 + $0x10] sm:$0xff] (!%p1949_p7) }
 0x3c7   : > { %v1448_v20 = vpop.xlane.xlu0 %1447 }
 0x3c8   : > { %v1476_v29 = vadd.f32 %v1448_v20, %v1236_v26 }
 0x3c9   : > { %v1424_v45 = vpop.xlane.xlu1 %1423  ;;  %v2211_v40 = vpop.eup %2210 }
 0x3ca   : > { %1493 = vst.msk [vmem:[#allocation4 + $0x48] sm:$0xff] %vm1483_vm13, %v1476_v29  ;;  %v1468_v28 = vadd.f32 %v1424_v45, %v1228_v31  ;;  %v2213_v19 = vpop.eup %2212  ;;  %v1233_v20 = vmul.f32 %v2211_v40, %v1217_v52  ;;  %v1218_v31 = vld [vmem:[#allocation4 + $0x38] sm:$0xff] }
 0x3cb   : > { %v2215_v17 = vpop.eup %2214  ;;  %v1234_v45 = vmul.f32 %v2213_v19, %v1218_v31  ;;  %v1731_v19 = vld [vmem:[#allocation5 + $0x18] sm:$0xff] (!%p1949_p7) }
 0x3cc   : > { %1485 = vst.msk [vmem:[#allocation4 + $0x8] sm:$0xff] %vm1483_vm13, %v1468_v28  ;;  %v2217_v18 = vpop.eup %2216  ;;  %v1241_v21 = vmul.f32 %v2215_v17, %v1225_v51 }
 0x3cd   : > { %v1451_v50 = vpop.xlane.xlu1 %1450  ;;  %v1664_v10 = vld [vmem:[#allocation4] sm:$0xff] (!%p1949_p7) }
 0x3ce   : > { %v1477_v57 = vadd.f32 %v1451_v50, %v1237_v0  ;;  %v1242_v0 = vmul.f32 %v2217_v18, %v1226_v55  ;;  %v1531_v50 = vld [vmem:[#allocation5 + $0x78] sm:$0xff]  ;;  %2218 = vlog2.f32 (!%p1949_p7), %v1664_v10  ;;  %v1657_v10 = vld [vmem:[#allocation3 + $0x48] sm:$0xff] (!%p1949_p7) }
 0x3d0   : > { %1494 = vst.msk [vmem:[#allocation4 + $0x50] sm:$0xff] %vm1483_vm13, %v1477_v57 }
 0x3d1   : > { %v1427_v58 = vpop.xlane.xlu0 %1426 }
 0x3d2   : > { %v1469_v25 = vadd.f32 %v1427_v58, %v1229_v24 }
 0x3d3   : > { %v1665_v57 = vld [vmem:[#allocation4 + $0x8] sm:$0xff] (!%p1949_p7) }
 0x3d4   : > { %1486 = vst.msk [vmem:[#allocation4 + $0x10] sm:$0xff] %vm1483_vm13, %v1469_v25  ;;  %2220 = vlog2.f32 (!%p1949_p7), %v1665_v57 }
 0x3d5   : > { %v1430_v12 = vpop.xlane.xlu0 %1429 }
 0x3d6   : > { %v1470_v4 = vadd.f32 %v1430_v12, %v1230_v48  ;;  %v1673_v48 = vld [vmem:[#allocation4 + $0x48] sm:$0xff] (!%p1949_p7) }
 0x3d7   : > { %v1674_v13 = vld [vmem:[#allocation4 + $0x50] sm:$0xff] (!%p1949_p7) }
 0x3d8   : > { %1487 = vst.msk [vmem:[#allocation4 + $0x18] sm:$0xff] %vm1483_vm13, %v1470_v4  ;;  %v2219_v12 = vpop.eup (!%p1949_p7), %2218 }
 0x3d9   : > { %v1681_v56 = vmul.f32 (!%p1949_p7), 0.6931472, %v2219_v12 }
 0x3db   : > { %v1454_v6 = vpop.xlane.xlu0 %1453  ;;  %v1666_v24 = vld [vmem:[#allocation4 + $0x10] sm:$0xff] (!%p1949_p7) }
 0x3dc   : > { %v1433_v33 = vpop.xlane.xlu1 %1432  ;;  %v1478_v30 = vadd.f32 %v1454_v6, %v1238_v23  ;;  %2222 = vlog2.f32 (!%p1949_p7), %v1666_v24 }
 0x3dd   : > { %v1471_v60 = vadd.f32 %v1433_v33, %v1231_v44  ;;  %v1728_v44 = vld [vmem:[#allocation5] sm:$0xff] (!%p1949_p7) }
 0x3de   : > { %1495 = vst.msk [vmem:[#allocation4 + $0x58] sm:$0xff] %vm1483_vm13, %v1478_v30  ;;  %v2221_v4 = vpop.eup (!%p1949_p7), %2220  ;;  %v1712_v30 = vadd.f32 (!%p1949_p7), %v1681_v56, %v1648_v54  ;;  %v1659_v54 = vld [vmem:[#allocation3 + $0x58] sm:$0xff] (!%p1949_p7) }
 0x3df   : > { %1488 = vst.msk [vmem:[#allocation4 + $0x20] sm:$0xff] %vm1483_vm13, %v1471_v60  ;;  %v1436_v32 = vpop.xlane.xlu0 %1435  ;;  %v1667_v46 = vld [vmem:[#allocation4 + $0x18] sm:$0xff] (!%p1949_p7)  ;;  %v1683_v6 = vmul.f32 (!%p1949_p7), 0.6931472, %v2221_v4 }
 0x3e0   : > { %v1457_v37 = vpop.xlane.xlu1 %1456  ;;  %v1472_v26 = vadd.f32 %v1436_v32, %v1232_v43  ;;  %2224 = vlog2.f32 (!%p1949_p7), %v1667_v46  ;;  %v1651_v43 = vld [vmem:[#allocation3 + $0x18] sm:$0xff] (!%p1949_p7) }
 0x3e1   : > { %v1479_v5 = vadd.f32 %v1457_v37, %v1239_v27  ;;  %v1713_v32 = vadd.f32 (!%p1949_p7), %v1683_v6, %v1649_v63  ;;  %v1652_v37 = vld [vmem:[#allocation3 + $0x20] sm:$0xff] (!%p1949_p7)  ;;  %v1738_v63 = vld [vmem:[#allocation5 + $0x50] sm:$0xff] (!%p1949_p7) }
 0x3e2   : > { %1489 = vst.msk [vmem:[#allocation4 + $0x28] sm:$0xff] %vm1483_vm13, %v1472_v26 }
 0x3e3   : > { %1496 = vst.msk [vmem:[#allocation4 + $0x60] sm:$0xff] %vm1483_vm13, %v1479_v5  ;;  %v1460_v29 = vpop.xlane.xlu0 %1459  ;;  %v1744_v5 = vsub.f32 (!%p1949_p7), %v1712_v30, %v1728_v44  ;;  %v1745_v17 = vsub.f32 (!%p1949_p7), %v1713_v32, %v1729_v9  ;;  %v1661_v30 = vld [vmem:[#allocation3 + $0x68] sm:$0xff] (!%p1949_p7)  ;;  %v1662_v32 = vld [vmem:[#allocation3 + $0x70] sm:$0xff] (!%p1949_p7) }
 0x3e4   : > { %v1439_v38 = vpop.xlane.xlu1 %1438  ;;  %v1480_v7 = vadd.f32 %v1460_v29, %v1240_v42  ;;  %v1653_v29 = vld [vmem:[#allocation3 + $0x28] sm:$0xff] (!%p1949_p7) }
 0x3e5   : > { %v1473_v62 = vadd.f32 %v1439_v38, %v1233_v20  ;;  %v1675_v15 = vld [vmem:[#allocation4 + $0x58] sm:$0xff] (!%p1949_p7)  ;;  %1760 = vst.msk [vmem:[%s3904_s4] sm:$0xff] (!%p1949_p7), %vm1483_vm13, %v1744_v5  ;;  %1761 = vst.msk [vmem:[%s3904_s4 + $0x8] sm:$0xff] (!%p1949_p7), %vm1483_vm13, %v1745_v17 }
 0x3e6   : > { %1497 = vst.msk [vmem:[#allocation4 + $0x68] sm:$0xff] %vm1483_vm13, %v1480_v7  ;;  %v1668_v58 = vld [vmem:[#allocation4 + $0x20] sm:$0xff] (!%p1949_p7)  ;;  %v2223_v14 = vpop.eup (!%p1949_p7), %2222  ;;  %v1663_v5 = vld [vmem:[#allocation3 + $0x78] sm:$0xff] (!%p1949_p7) }
 0x3e7   : > { %1490 = vst.msk [vmem:[#allocation4 + $0x30] sm:$0xff] %vm1483_vm13, %v1473_v62  ;;  %v1442_v8 = vpop.xlane.xlu0 %1441  ;;  %2226 = vlog2.f32 (!%p1949_p7), %v1668_v58  ;;  %v1685_v60 = vmul.f32 (!%p1949_p7), 0.6931472, %v2223_v14  ;;  %v1732_v7 = vld [vmem:[#allocation5 + $0x20] sm:$0xff] (!%p1949_p7)  ;;  %v1654_v62 = vld [vmem:[#allocation3 + $0x30] sm:$0xff] (!%p1949_p7) }
 0x3e8   : > { %v1463_v61 = vpop.xlane.xlu1 %1462  ;;  %v1474_v28 = vadd.f32 %v1442_v8, %v1234_v45  ;;  %v1733_v8 = vld [vmem:[#allocation5 + $0x28] sm:$0xff] (!%p1949_p7)  ;;  %v1736_v58 = vld [vmem:[#allocation5 + $0x40] sm:$0xff] (!%p1949_p7) }
 0x3e9   : > { %v1481_v59 = vadd.f32 %v1463_v61, %v1241_v21  ;;  %v1669_v49 = vld [vmem:[#allocation4 + $0x28] sm:$0xff] (!%p1949_p7)  ;;  %v1714_v42 = vadd.f32 (!%p1949_p7), %v1685_v60, %v1650_v3  ;;  %v1655_v61 = vld [vmem:[#allocation3 + $0x38] sm:$0xff] (!%p1949_p7)  ;;  %v1660_v14 = vld [vmem:[#allocation3 + $0x60] sm:$0xff] (!%p1949_p7) }
 0x3ea   : > { %1491 = vst.msk [vmem:[#allocation4 + $0x38] sm:$0xff] %vm1483_vm13, %v1474_v28  ;;  %2228 = vlog2.f32 (!%p1949_p7), %v1669_v49  ;;  %v1676_v23 = vld [vmem:[#allocation4 + $0x60] sm:$0xff] (!%p1949_p7)  ;;  %v2225_v33 = vpop.eup (!%p1949_p7), %2224 }
 0x3eb   : > { %1498 = vst.msk [vmem:[#allocation4 + $0x70] sm:$0xff] %vm1483_vm13, %v1481_v59  ;;  %v1466_v53 = vpop.xlane.xlu0 %1465  ;;  %v1687_v40 = vmul.f32 (!%p1949_p7), 0.6931472, %v2225_v33  ;;  %v1746_v18 = vsub.f32 (!%p1949_p7), %v1714_v42, %v1730_v41 }
 0x3ec   : > { %v1608_v34 = vpop.xlane.xlu1 %1607  ;;  %v1482_v36 = vadd.f32 %v1466_v53, %v1242_v0  ;;  %1647 = sbr.rel (%p1949_p7) target bundleno = 1036 (0x40c), region = 48  ;;  %v1734_v0 = vld [vmem:[#allocation5 + $0x30] sm:$0xff] (!%p1949_p7) }
 0x3ed   : > { %v1626_v11 = vadd.f32 %v1608_v34, %v1530_v39  ;;  %v1677_v22 = vld [vmem:[#allocation4 + $0x68] sm:$0xff] (!%p1949_p7)  ;;  %v1715_v38 = vadd.f32 (!%p1949_p7), %v1687_v40, %v1651_v43  ;;  %v1656_v34 = vld [vmem:[#allocation3 + $0x40] sm:$0xff] (!%p1949_p7)  ;;  %1762 = vst.msk [vmem:[%s3904_s4 + $0x10] sm:$0xff] (!%p1949_p7), %vm1483_vm13, %v1746_v18 }
 0x3ee   : > { %1499 = vst.msk [vmem:[#allocation4 + $0x78] sm:$0xff] %vm1483_vm13, %v1482_v36  ;;  %v1670_v25 = vld [vmem:[#allocation4 + $0x30] sm:$0xff] (!%p1949_p7) }
 0x3ef   : > { %1642 = vst.msk [vmem:[#allocation5 + $0x70] sm:$0xff] %vm1483_vm13, %v1626_v11  ;;  %v1611_v47 = vpop.xlane.xlu0 %1610  ;;  %2230 = vlog2.f32 (!%p1949_p7), %v1670_v25  ;;  %v1747_v59 = vsub.f32 (!%p1949_p7), %v1715_v38, %v1731_v19  ;;  %v1658_v25 = vld [vmem:[#allocation3 + $0x50] sm:$0xff] (!%p1949_p7) }
 0x3f0   : > { %v1627_v35 = vadd.f32 %v1611_v47, %v1531_v50  ;;  %v1735_v47 = vld [vmem:[#allocation5 + $0x38] sm:$0xff] (!%p1949_p7) }
 0x3f1   : > { %v1671_v2 = vld [vmem:[#allocation4 + $0x38] sm:$0xff] (!%p1949_p7)  ;;  %v2227_v27 = vpop.eup (!%p1949_p7), %2226  ;;  %1763 = vst.msk [vmem:[%s3904_s4 + $0x18] sm:$0xff] (!%p1949_p7), %vm1483_vm13, %v1747_v59 }
 0x3f2   : > { %1643 = vst.msk [vmem:[#allocation5 + $0x78] sm:$0xff] %vm1483_vm13, %v1627_v35  ;;  %2232 = vlog2.f32 (!%p1949_p7), %v1671_v2  ;;  %v1678_v1 = vld [vmem:[#allocation4 + $0x70] sm:$0xff] (!%p1949_p7)  ;;  %v1689_v20 = vmul.f32 (!%p1949_p7), 0.6931472, %v2227_v27 }
 0x3f3   : > { %2234 = vlog2.f32 %v1672_v16 }
 0x3f4   : > { %2236 = vlog2.f32 %v1673_v48  ;;  %v2229_v52 = vpop.eup %2228  ;;  %v1716_v21 = vadd.f32 %v1689_v20, %v1652_v37 }
 0x3f5   : > { %2238 = vlog2.f32 %v1674_v13  ;;  %v1679_v26 = vld [vmem:[#allocation4 + $0x78] sm:$0xff]  ;;  %v1691_v51 = vmul.f32 0.6931472, %v2229_v52  ;;  %v1737_v13 = vld [vmem:[#allocation5 + $0x48] sm:$0xff] }
 0x3f6   : > { %2240 = vlog2.f32 %v1675_v15  ;;  %v1748_v11 = vsub.f32 %v1716_v21, %v1732_v7  ;;  %v1742_v20 = vld [vmem:[#allocation5 + $0x70] sm:$0xff] }
 0x3f7   : > { %2242 = vlog2.f32 %v1676_v23  ;;  %v1717_v39 = vadd.f32 %v1691_v51, %v1653_v29 }
 0x3f8   : > { %2244 = vlog2.f32 %v1677_v22  ;;  %1764 = vst.msk [vmem:[%s3904_s4 + $0x20] sm:$0xff] %vm1483_vm13, %v1748_v11  ;;  %v1739_v22 = vld [vmem:[#allocation5 + $0x58] sm:$0xff] }
 0x3f9   : > { %2246 = vlog2.f32 %v1678_v1  ;;  %v2231_v31 = vpop.eup %2230  ;;  %v1749_v24 = vsub.f32 %v1717_v39, %v1733_v8  ;;  %v1740_v1 = vld [vmem:[#allocation5 + $0x60] sm:$0xff]  ;;  %v1743_v38 = vld [vmem:[#allocation5 + $0x78] sm:$0xff] }
 0x3fa   : > { %2248 = vlog2.f32 %v1679_v26  ;;  %v1693_v55 = vmul.f32 0.6931472, %v2231_v31  ;;  %v1741_v26 = vld [vmem:[#allocation5 + $0x68] sm:$0xff] }
 0x3fb   : > { %1765 = vst.msk [vmem:[%s3904_s4 + $0x28] sm:$0xff] %vm1483_vm13, %v1749_v24 }
 0x3fc   : > { %v2233_v45 = vpop.eup %2232  ;;  %v1718_v50 = vadd.f32 %v1693_v55, %v1654_v62 }
 0x3fd   : > { %v2235_v28 = vpop.eup %2234  ;;  %v1695_v53 = vmul.f32 0.6931472, %v2233_v45 }
 0x3fe   : > { %v2237_v36 = vpop.eup %2236  ;;  %v1697_v35 = vmul.f32 0.6931472, %v2235_v28  ;;  %v1750_v16 = vsub.f32 %v1718_v50, %v1734_v0 }
 0x3ff   : > { %v2239_v57 = vpop.eup %2238  ;;  %v1719_v46 = vadd.f32 %v1695_v53, %v1655_v61  ;;  %v1699_v49 = vmul.f32 0.6931472, %v2237_v36 }
 0x400   : > { %v2241_v2 = vpop.eup %2240  ;;  %v1720_v48 = vadd.f32 %v1697_v35, %v1656_v34  ;;  %v1701_v12 = vmul.f32 0.6931472, %v2239_v57  ;;  %1766 = vst.msk [vmem:[%s3904_s4 + $0x30] sm:$0xff] %vm1483_vm13, %v1750_v16 }
 0x401   : > { %v2243_v15 = vpop.eup %2242  ;;  %v1751_v4 = vsub.f32 %v1719_v46, %v1735_v47  ;;  %v1721_v56 = vadd.f32 %v1699_v49, %v1657_v10  ;;  %v1703_v23 = vmul.f32 0.6931472, %v2241_v2 }
 0x402   : > { %v2245_v44 = vpop.eup %2244  ;;  %v1752_v6 = vsub.f32 %v1720_v48, %v1736_v58  ;;  %v1722_v3 = vadd.f32 %v1701_v12, %v1658_v25  ;;  %v1705_v33 = vmul.f32 0.6931472, %v2243_v15 }
 0x403   : > { %v2247_v9 = vpop.eup %2246  ;;  %1767 = vst.msk [vmem:[%s3904_s4 + $0x38] sm:$0xff] %vm1483_vm13, %v1751_v4  ;;  %v1753_v60 = vsub.f32 %v1721_v56, %v1737_v13  ;;  %v1723_v43 = vadd.f32 %v1703_v23, %v1659_v54  ;;  %v1707_v27 = vmul.f32 0.6931472, %v2245_v44 }
 0x404   : > { %v2249_v41 = vpop.eup %2248  ;;  %1768 = vst.msk [vmem:[%s3904_s4 + $0x40] sm:$0xff] %vm1483_vm13, %v1752_v6  ;;  %v1754_v40 = vsub.f32 %v1722_v3, %v1738_v63  ;;  %v1724_v37 = vadd.f32 %v1705_v33, %v1660_v14  ;;  %v1709_v52 = vmul.f32 0.6931472, %v2247_v9 }
 0x405   : > { %1769 = vst.msk [vmem:[%s3904_s4 + $0x48] sm:$0xff] %vm1483_vm13, %v1753_v60  ;;  %v1755_v42 = vsub.f32 %v1723_v43, %v1739_v22  ;;  %v1725_v19 = vadd.f32 %v1707_v27, %v1661_v30  ;;  %v1711_v29 = vmul.f32 0.6931472, %v2249_v41 }
 0x406   : > { %1770 = vst.msk [vmem:[%s3904_s4 + $0x50] sm:$0xff] %vm1483_vm13, %v1754_v40  ;;  %v1756_v31 = vsub.f32 %v1724_v37, %v1740_v1  ;;  %v1726_v17 = vadd.f32 %v1709_v52, %v1662_v32 }
 0x407   : > { %1771 = vst.msk [vmem:[%s3904_s4 + $0x58] sm:$0xff] %vm1483_vm13, %v1755_v42  ;;  %v1757_v7 = vsub.f32 %v1725_v19, %v1741_v26  ;;  %v1727_v51 = vadd.f32 %v1711_v29, %v1663_v5 }
 0x408   : > { %1772 = vst.msk [vmem:[%s3904_s4 + $0x60] sm:$0xff] %vm1483_vm13, %v1756_v31  ;;  %v1758_v62 = vsub.f32 %v1726_v17, %v1742_v20 }
 0x409   : > { %1773 = vst.msk [vmem:[%s3904_s4 + $0x68] sm:$0xff] %vm1483_vm13, %v1757_v7  ;;  %v1759_v45 = vsub.f32 %v1727_v51, %v1743_v38 }
 0x40a   : > { %1774 = vst.msk [vmem:[%s3904_s4 + $0x70] sm:$0xff] %vm1483_vm13, %v1758_v62 }
 0x40b   : > { %1775 = vst.msk [vmem:[%s3904_s4 + $0x78] sm:$0xff] %vm1483_vm13, %v1759_v45 }
 0x40c PF: > { %s17_s20 = sadd.s32 1, %s2330_s20   ;;  %s4052_s15 = smov %s2314_s16 }
 0x40d   : > { %p14_p5 = scmp.ge.s32.totalorder %s17_s20, 6   ;;  %s4053_s16 = smov %s2318_s17 }
 0x40e   : > { %s4054_s17 = smov %s2413_s27  ;;  %s4055_s18 = smov %s2326_s19 }
 0x40f   : > { %s4056_s19 = smov %s4058_s22  ;;  %16 = sbr.rel (!%p14_p5) target bundleno = 4 (0x4), region = 93 }
 0x416   :  { %1798 = vsyncpa [#allocation7], 1 }
 0x417   :  { %1800 = vsyncpa [#allocation7 + $0x1], 1 }

</bundles_post_ra>
